<compile_context>
chip_gen: v5e
topology: v5e:2x2
jax: 0.10.0
libtpu: 0.0.40
codegen_flags: <defaults>
</compile_context>

<pallas_src>
import functools
import math

import jax
import jax.numpy as jnp
from jax.experimental import pallas as pl
from jax.experimental.pallas import tpu as pltpu


def _default_vmem_limit():
    """~48 MiB is safe on v7x (64 MiB/TC); allow up to 96 MiB on v5e/v6e (128 MiB)."""
    try:
        cap = int(pltpu.get_tpu_info().vmem_capacity_bytes)
        return min(96 * 1024 * 1024, (cap * 3) // 4)
    except Exception:
        return 48 * 1024 * 1024


_VMEM_LIMIT = _default_vmem_limit()


def _pick_tile(dim, target, align):
    """Largest multiple-of-`align` tile <= target that divides `dim`; otherwise the
    full dim (full-extent blocks are always legal for the (8,128) rule)."""
    if dim <= target:
        return dim
    t = (target // align) * align
    while t >= align:
        if dim % t == 0:
            return t
        t -= align
    return dim


def _row_tiling(M, target):
    """Pick (padded_M, tm). Awkward row counts are padded up to a multiple of 256
    instead of silently falling back to tiny tiles that underfill the MXU."""
    t = _pick_tile(M, target, 8)
    if M <= target or t >= 128:
        return M, t
    Mp = ((M + 255) // 256) * 256
    return Mp, 256


# ----------------------------------------------------------------------------
# Pallas kernels
# ----------------------------------------------------------------------------
def _matmul_bias_kernel(x_ref, w_ref, b_ref, o_ref, acc_ref, *, act):
    # Tiled GEMM: x (tm, tk) bf16 @ w (tk, tn) bf16 -> f32 accumulator.
    @pl.when(pl.program_id(2) == 0)
    def _():
        acc_ref[...] = jnp.zeros_like(acc_ref)

    acc_ref[...] += jnp.dot(x_ref[...], w_ref[...],
                            preferred_element_type=jnp.float32)

    @pl.when(pl.program_id(2) == pl.num_programs(2) - 1)
    def _():
        h = acc_ref[...] + b_ref[...]
        if act == "gelu":
            # exact GELU (matches torch.nn.functional.gelu default), kept in f32
            h = 0.5 * h * (1.0 + jax.lax.erf(h * (1.0 / math.sqrt(2.0))))
        o_ref[...] = h.astype(o_ref.dtype)


def matmul_bias(x, w, b, act=None, *, tm=512, tn=512, tk=512):
    """bf16 x:(M,K) @ bf16 w:(K,N) + f32 b -> [gelu] -> bf16, tiled with f32 acc."""
    M, K = x.shape
    _, N = w.shape
    Mp, tm = _row_tiling(M, tm)
    if Mp != M:
        x = jnp.pad(x, ((0, Mp - M), (0, 0)))
    tn = _pick_tile(N, tn, 128)
    tk = _pick_tile(K, tk, 128)
    kernel = functools.partial(_matmul_bias_kernel, act=act)
    out = pl.pallas_call(
        kernel,
        out_shape=jax.ShapeDtypeStruct((Mp, N), jnp.bfloat16),
        grid_spec=pltpu.PrefetchScalarGridSpec(
            num_scalar_prefetch=0,
            grid=(Mp // tm, N // tn, K // tk),
            in_specs=[
                pl.BlockSpec((tm, tk), lambda i, j, k: (i, k)),
                pl.BlockSpec((tk, tn), lambda i, j, k: (k, j)),
                pl.BlockSpec((1, tn), lambda i, j, k: (0, j)),
            ],
            out_specs=pl.BlockSpec((tm, tn), lambda i, j, k: (i, j)),
            scratch_shapes=[pltpu.VMEM((tm, tn), jnp.float32)],
        ),
        compiler_params=pltpu.CompilerParams(
            dimension_semantics=("parallel", "parallel", "arbitrary"),
            vmem_limit_bytes=_VMEM_LIMIT,
        ),
    )(x.astype(jnp.bfloat16), w.astype(jnp.bfloat16),
      b.reshape(1, N).astype(jnp.float32))
    return out if Mp == M else out[:M]


def _matmul_ln_kernel(x_ref, w_ref, b_ref, r_ref, g_ref, bt_ref, o_ref, acc_ref,
                      *, eps):
    # Tiled GEMM with fused epilogue: LayerNorm((x@w + b) + residual).
    @pl.when(pl.program_id(1) == 0)
    def _():
        acc_ref[...] = jnp.zeros_like(acc_ref)

    acc_ref[...] += jnp.dot(x_ref[...], w_ref[...],
                            preferred_element_type=jnp.float32)

    @pl.when(pl.program_id(1) == pl.num_programs(1) - 1)
    def _():
        h = acc_ref[...] + b_ref[...] + r_ref[...].astype(jnp.float32)
        mu = jnp.mean(h, axis=-1, keepdims=True)
        var = jnp.mean((h - mu) * (h - mu), axis=-1, keepdims=True)
        y = ((h - mu) * jax.lax.rsqrt(var + eps)) * g_ref[...] + bt_ref[...]
        o_ref[...] = y.astype(o_ref.dtype)


def matmul_bias_residual_ln(x, w, b, residual, gamma, beta, eps=1e-5,
                            *, tm=512, tk=512):
    """LayerNorm(x@w + b + residual). Full-N output block so row stats are local."""
    M, K = x.shape
    _, N = w.shape
    Mp, tm = _row_tiling(M, tm)
    if Mp != M:
        x = jnp.pad(x, ((0, Mp - M), (0, 0)))
        residual = jnp.pad(residual, ((0, Mp - M), (0, 0)))
    tk = _pick_tile(K, tk, 128)
    kernel = functools.partial(_matmul_ln_kernel, eps=eps)
    out = pl.pallas_call(
        kernel,
        out_shape=jax.ShapeDtypeStruct((Mp, N), jnp.bfloat16),
        grid_spec=pltpu.PrefetchScalarGridSpec(
            num_scalar_prefetch=0,
            grid=(Mp // tm, K // tk),
            in_specs=[
                pl.BlockSpec((tm, tk), lambda i, k: (i, k)),
                pl.BlockSpec((tk, N), lambda i, k: (k, 0)),
                pl.BlockSpec((1, N), lambda i, k: (0, 0)),
                pl.BlockSpec((tm, N), lambda i, k: (i, 0)),
                pl.BlockSpec((1, N), lambda i, k: (0, 0)),
                pl.BlockSpec((1, N), lambda i, k: (0, 0)),
            ],
            out_specs=pl.BlockSpec((tm, N), lambda i, k: (i, 0)),
            scratch_shapes=[pltpu.VMEM((tm, N), jnp.float32)],
        ),
        compiler_params=pltpu.CompilerParams(
            dimension_semantics=("parallel", "arbitrary"),
            vmem_limit_bytes=_VMEM_LIMIT,
        ),
    )(x.astype(jnp.bfloat16), w.astype(jnp.bfloat16),
      b.reshape(1, N).astype(jnp.float32), residual.astype(jnp.bfloat16),
      gamma.reshape(1, N).astype(jnp.float32),
      beta.reshape(1, N).astype(jnp.float32))
    return out if Mp == M else out[:M]


def _embed_ln_kernel(we_ref, pe_ref, g_ref, b_ref, o_ref, *, eps):
    # LayerNorm(word_emb + pos_emb): bf16 inputs, f32 statistics, bf16 out.
    h = we_ref[0].astype(jnp.float32) + pe_ref[...].astype(jnp.float32)
    mu = jnp.mean(h, axis=-1, keepdims=True)
    var = jnp.mean((h - mu) * (h - mu), axis=-1, keepdims=True)
    y = ((h - mu) * jax.lax.rsqrt(var + eps)) * g_ref[...] + b_ref[...]
    o_ref[0] = y.astype(o_ref.dtype)


def embed_layernorm(word_emb, pos_emb, gamma, beta, eps=1e-5, *, ts=512):
    """(B,S,H) bf16 word embeddings + (S,H) bf16 pos embeddings -> LN -> bf16.
    pos_emb rows are re-used across the batch via the index_map (no broadcast)."""
    B, S, H = word_emb.shape
    ts = _pick_tile(S, ts, 8)
    kernel = functools.partial(_embed_ln_kernel, eps=eps)
    return pl.pallas_call(
        kernel,
        out_shape=jax.ShapeDtypeStruct((B, S, H), jnp.bfloat16),
        grid_spec=pltpu.PrefetchScalarGridSpec(
            num_scalar_prefetch=0,
            grid=(B, S // ts),
            in_specs=[
                pl.BlockSpec((1, ts, H), lambda b, s: (b, s, 0)),
                pl.BlockSpec((ts, H), lambda b, s: (s, 0)),
                pl.BlockSpec((1, H), lambda b, s: (0, 0)),
                pl.BlockSpec((1, H), lambda b, s: (0, 0)),
            ],
            out_specs=pl.BlockSpec((1, ts, H), lambda b, s: (b, s, 0)),
        ),
        compiler_params=pltpu.CompilerParams(
            dimension_semantics=("parallel", "parallel"),
            vmem_limit_bytes=_VMEM_LIMIT,
        ),
    )(word_emb.astype(jnp.bfloat16), pos_emb.astype(jnp.bfloat16),
      gamma.reshape(1, H).astype(jnp.float32),
      beta.reshape(1, H).astype(jnp.float32))


def _attention_kernel(q_ref, k_ref, v_ref, o_ref, *, heads_per_group, d_head,
                      scale):
    # One (batch, query-block, head-group) per grid step.
    # q block (1, tq, gw), k/v blocks (1, S, gw), out block (1, tq, gw).
    # gw is a 128-lane head group in production -> lane-dense loads and a single
    # lane-dense store; the 1/sqrt(Dh) scale is folded into q (tq*gw work), not
    # into the (tq,S) scores.
    q = (q_ref[0].astype(jnp.float32) * scale).astype(q_ref.dtype)   # (tq, gw)
    k = k_ref[0]                                                      # (S, gw)
    v = v_ref[0]
    outs = []
    for h in range(heads_per_group):        # <=2 heads unrolled in production
        sl = slice(h * d_head, (h + 1) * d_head)
        s = jax.lax.dot_general(
            q[:, sl], k[:, sl], (((1,), (1,)), ((), ())),
            preferred_element_type=jnp.float32)                       # (tq, S)
        m = jnp.max(s, axis=-1, keepdims=True)
        p = jnp.exp(s - m)
        p = p * pl.reciprocal(jnp.sum(p, axis=-1, keepdims=True), approx=True)
        outs.append(jnp.dot(p.astype(v.dtype), v[:, sl],
                            preferred_element_type=jnp.float32))      # (tq, Dh)
    ctx = outs[0] if len(outs) == 1 else jnp.concatenate(outs, axis=-1)
    o_ref[0] = ctx.astype(o_ref.dtype)
    # TODO(synk): for long sequences (S >= ~2k) convert the KV dimension to a
    # flash-style online-softmax grid axis instead of full-(tq,S) scores.


def _head_group_width(H, Dh):
    if H % 128 == 0 and 128 % Dh == 0:
        return 128            # pack heads into 128-lane stripes (e.g. 2 x Dh=64)
    if Dh % 128 == 0:
        return Dh             # one wide head per group
    return H                  # tiny models: all heads in one full-width group


def multihead_attention(qkv, *, n_heads, hidden):
    """qkv: (B, S, 3H) bf16 packed [q|k|v] -> (B, S, H) bf16 attention output."""
    B, S, _ = qkv.shape
    H = hidden
    Dh = H // n_heads
    gw = _head_group_width(H, Dh)
    n_groups = H // gw
    heads_per_group = gw // Dh
    tq = _pick_tile(S, 256, 8)
    scale = 1.0 / math.sqrt(Dh)

    if gw % 128 == 0:
        # Packed path: q/k/v selected by column-block index maps on the same
        # array -> no XLA slice copies of the QKV GEMM output.
        arrs = (qkv, qkv, qkv)
        q_map = lambda b, qi, g: (b, qi, g)
        k_map = lambda b, qi, g: (b, 0, g + n_groups)
        v_map = lambda b, qi, g: (b, 0, g + 2 * n_groups)
    else:
        # Small-hidden fallback (demo sizes): split in XLA so the kernel's block
        # width equals the full last dim (keeps the (8,128) block rule).
        q3 = qkv.reshape(B, S, 3, H)
        arrs = (q3[:, :, 0, :], q3[:, :, 1, :], q3[:, :, 2, :])
        q_map = lambda b, qi, g: (b, qi, g)
        k_map = lambda b, qi, g: (b, 0, g)
        v_map = lambda b, qi, g: (b, 0, g)

    kernel = functools.partial(_attention_kernel,
                               heads_per_group=heads_per_group,
                               d_head=Dh, scale=scale)
    return pl.pallas_call(
        kernel,
        out_shape=jax.ShapeDtypeStruct((B, S, H), jnp.bfloat16),
        grid_spec=pltpu.PrefetchScalarGridSpec(
            num_scalar_prefetch=0,
            grid=(B, S // tq, n_groups),
            in_specs=[
                pl.BlockSpec((1, tq, gw), q_map),
                pl.BlockSpec((1, S, gw), k_map),
                pl.BlockSpec((1, S, gw), v_map),
            ],
            out_specs=pl.BlockSpec((1, tq, gw), lambda b, qi, g: (b, qi, g)),
        ),
        compiler_params=pltpu.CompilerParams(
            dimension_semantics=("parallel", "parallel", "parallel"),
            vmem_limit_bytes=_VMEM_LIMIT,
        ),
    )(arrs[0].astype(jnp.bfloat16), arrs[1].astype(jnp.bfloat16),
      arrs[2].astype(jnp.bfloat16))


# ----------------------------------------------------------------------------
# Encoder (RoBERTa-like) built from the kernels above
# ----------------------------------------------------------------------------
def init_params(key, vocab, max_pos, hidden, n_heads, intermediate, n_layers):
    """Weights are stored pre-packed / pre-cast (bf16 matrices, f32 bias/LN)."""
    keys = jax.random.split(key, 2 + n_layers)
    std = 0.02
    params = {
        "word_emb": (std * jax.random.normal(keys[0], (vocab, hidden),
                                             jnp.float32)).astype(jnp.bfloat16),
        "pos_emb": (std * jax.random.normal(keys[1], (max_pos, hidden),
                                            jnp.float32)).astype(jnp.bfloat16),
        "emb_ln_g": jnp.ones((hidden,), jnp.float32),
        "emb_ln_b": jnp.zeros((hidden,), jnp.float32),
        "layers": [],
    }
    for l in range(n_layers):
        lk = jax.random.split(keys[2 + l], 6)
        wq = std * jax.random.normal(lk[0], (hidden, hidden), jnp.float32)
        wk = std * jax.random.normal(lk[1], (hidden, hidden), jnp.float32)
        wv = std * jax.random.normal(lk[2], (hidden, hidden), jnp.float32)
        layer = {
            # fused Q|K|V projection packed once at init (no per-forward concat)
            "wqkv": jnp.concatenate([wq, wk, wv], axis=1).astype(jnp.bfloat16),
            "bqkv": jnp.zeros((3 * hidden,), jnp.float32),
            "wo": (std * jax.random.normal(lk[3], (hidden, hidden),
                                           jnp.float32)).astype(jnp.bfloat16),
            "bo": jnp.zeros((hidden,), jnp.float32),
            "ln1_g": jnp.ones((hidden,), jnp.float32),
            "ln1_b": jnp.zeros((hidden,), jnp.float32),
            "w_ffn1": (std * jax.random.normal(lk[4], (hidden, intermediate),
                                               jnp.float32)).astype(jnp.bfloat16),
            "b_ffn1": jnp.zeros((intermediate,), jnp.float32),
            "w_ffn2": (std * jax.random.normal(lk[5], (intermediate, hidden),
                                               jnp.float32)).astype(jnp.bfloat16),
            "b_ffn2": jnp.zeros((hidden,), jnp.float32),
            "ln2_g": jnp.ones((hidden,), jnp.float32),
            "ln2_b": jnp.zeros((hidden,), jnp.float32),
        }
        params["layers"].append(layer)
    return params


def seq2seq_forward(params, source_ids, is_train, *, n_heads):
    """Equivalent of Seq2Seq.forward: hidden_states = encoder(input_ids)[0]."""
    B, S = source_ids.shape
    H = params["word_emb"].shape[1]

    # --- embeddings: bf16 gather (glue) + fused pos-emb add + LayerNorm kernel ---
    we = jnp.take(params["word_emb"], source_ids, axis=0)            # (B,S,H) bf16
    x = embed_layernorm(we, params["pos_emb"][:S],
                        params["emb_ln_g"], params["emb_ln_b"])       # (B,S,H) bf16
    x = x.reshape(B * S, H)
    # dropout: identity (eval semantics); is_train only toggles the torch
    # module's downstream loss path, which does not affect hidden_states here.
    del is_train
    # TODO(synk): no attention/padding mask (real UniXcoder masks pad tokens) and
    # RoBERTa position-id offset / token_type embeddings are omitted.

    for layer in params["layers"]:
        # --- fused Q|K|V projection: one GEMM, bias added in the epilogue ---
        qkv = matmul_bias(x, layer["wqkv"], layer["bqkv"])            # (B*S,3H) bf16

        # --- self attention (heads packed into lane groups inside the kernel) ---
        ctx = multihead_attention(qkv.reshape(B, S, 3 * H),
                                  n_heads=n_heads, hidden=H).reshape(B * S, H)

        # --- output projection with fused bias + residual + LayerNorm ---
        x = matmul_bias_residual_ln(ctx, layer["wo"], layer["bo"],
                                    x, layer["ln1_g"], layer["ln1_b"])

        # --- feed forward: GELU fused in FFN1 epilogue, LN fused in FFN2 ---
        h = matmul_bias(x, layer["w_ffn1"], layer["b_ffn1"], act="gelu")
        x = matmul_bias_residual_ln(h, layer["w_ffn2"], layer["b_ffn2"],
                                    x, layer["ln2_g"], layer["ln2_b"])

    # TODO(synk): hidden states are carried in bf16 between layers (f32 stats /
    # accumulation inside kernels); will not bit-match torch fp32.
    return x.astype(jnp.float32).reshape(B, S, H)   # hidden_states


# ----------------------------------------------------------------------------
if __name__ == "__main__":
    B, S = 2, 8
    HIDDEN, HEADS, INTER = 32, 4, 64
    VOCAB, MAX_POS, LAYERS = 97, 64, 2

    key = jax.random.PRNGKey(0)
    k_param, k_ids = jax.random.split(key)
    params = init_params(k_param, VOCAB, MAX_POS, HIDDEN, HEADS, INTER, LAYERS)
    source_ids = jax.random.randint(k_ids, (B, S), 0, VOCAB, dtype=jnp.int32)

    fwd = jax.jit(functools.partial(seq2seq_forward, n_heads=HEADS),
                  static_argnames=("is_train",))
    hidden_states = fwd(params, source_ids, is_train=False)
    jax.block_until_ready(hidden_states)

    assert hidden_states.shape == (B, S, HIDDEN)
    assert bool(jnp.all(jnp.isfinite(hidden_states)))
    # TODO(synk): torch Seq2Seq also carries beam-search decode state (beam_size,
    # sos/eos ids, decoder) used outside this forward path; not part of hidden_states.
    print("KERNEL_OK")
</pallas_src>

<mosaic_0001>
module attributes {stable_mosaic.version = 11 : i64} {
  func.func @_embed_ln_kernel(%arg0: i32, %arg1: i32, %arg2: memref<1x8x32xbf16, #tpu.memory_space<vmem>>, %arg3: memref<8x32xbf16, #tpu.memory_space<vmem>>, %arg4: memref<1x32xf32, #tpu.memory_space<vmem>>, %arg5: memref<1x32xf32, #tpu.memory_space<vmem>>, %arg6: memref<1x8x32xbf16, #tpu.memory_space<vmem>>) attributes {dimension_semantics = [#tpu.dimension_semantics<parallel>, #tpu.dimension_semantics<parallel>], iteration_bounds = array<i64: 2, 1>, scalar_prefetch = 0 : i64, scratch_operands = 0 : i64, tpu.core_type = #tpu.core_type<tc>, window_params = [{transform_indices = @transform_0, window_bounds = array<i64: 1, 8, 32>}, {transform_indices = @transform_1, window_bounds = array<i64: 8, 32>}, {pipeline_mode = #tpu.pipeline_mode<synchronous>, transform_indices = @transform_2, window_bounds = array<i64: 1, 32>}, {pipeline_mode = #tpu.pipeline_mode<synchronous>, transform_indices = @transform_3, window_bounds = array<i64: 1, 32>}, {transform_indices = @transform_4, window_bounds = array<i64: 1, 8, 32>}]} {
    %c0 = arith.constant 0 : index
    %c0_0 = arith.constant 0 : index
    %c0_1 = arith.constant 0 : index
    %0 = vector.load %arg2[%c0, %c0_0, %c0_1] : memref<1x8x32xbf16, #tpu.memory_space<vmem>>, vector<1x8x32xbf16>
    %1 = vector.shape_cast %0 : vector<1x8x32xbf16> to vector<8x32xbf16>
    %2 = arith.extf %1 : vector<8x32xbf16> to vector<8x32xf32>
    %c0_2 = arith.constant 0 : index
    %c0_3 = arith.constant 0 : index
    %3 = vector.load %arg3[%c0_2, %c0_3] : memref<8x32xbf16, #tpu.memory_space<vmem>>, vector<8x32xbf16>
    %4 = arith.extf %3 : vector<8x32xbf16> to vector<8x32xf32>
    %5 = arith.addf %2, %4 : vector<8x32xf32>
    %cst = arith.constant dense<0.000000e+00> : vector<8xf32>
    %6 = vector.multi_reduction <add>, %5, %cst [1] : vector<8x32xf32> to vector<8xf32>
    %7 = vector.shape_cast %6 : vector<8xf32> to vector<8x1xf32>
    %cst_4 = arith.constant 3.200000e+01 : f32
    %8 = vector.broadcast %cst_4 : f32 to vector<8x1xf32>
    %9 = arith.divf %7, %8 : vector<8x1xf32>
    %10 = vector.broadcast %9 : vector<8x1xf32> to vector<8x32xf32>
    %11 = arith.subf %5, %10 : vector<8x32xf32>
    %12 = vector.broadcast %9 : vector<8x1xf32> to vector<8x32xf32>
    %13 = arith.subf %5, %12 : vector<8x32xf32>
    %14 = arith.mulf %11, %13 : vector<8x32xf32>
    %cst_5 = arith.constant dense<0.000000e+00> : vector<8xf32>
    %15 = vector.multi_reduction <add>, %14, %cst_5 [1] : vector<8x32xf32> to vector<8xf32>
    %16 = vector.shape_cast %15 : vector<8xf32> to vector<8x1xf32>
    %cst_6 = arith.constant 3.200000e+01 : f32
    %17 = vector.broadcast %cst_6 : f32 to vector<8x1xf32>
    %18 = arith.divf %16, %17 : vector<8x1xf32>
    %19 = vector.broadcast %9 : vector<8x1xf32> to vector<8x32xf32>
    %20 = arith.subf %5, %19 : vector<8x32xf32>
    %cst_7 = arith.constant 9.99999974E-6 : f32
    %21 = vector.broadcast %cst_7 : f32 to vector<8x1xf32>
    %22 = arith.addf %18, %21 : vector<8x1xf32>
    %23 = math.rsqrt %22 : vector<8x1xf32>
    %24 = vector.broadcast %23 : vector<8x1xf32> to vector<8x32xf32>
    %25 = arith.mulf %20, %24 : vector<8x32xf32>
    %c0_8 = arith.constant 0 : index
    %c0_9 = arith.constant 0 : index
    %26 = vector.load %arg4[%c0_8, %c0_9] : memref<1x32xf32, #tpu.memory_space<vmem>>, vector<1x32xf32>
    %27 = vector.broadcast %26 : vector<1x32xf32> to vector<8x32xf32>
    %28 = arith.mulf %25, %27 : vector<8x32xf32>
    %c0_10 = arith.constant 0 : index
    %c0_11 = arith.constant 0 : index
    %29 = vector.load %arg5[%c0_10, %c0_11] : memref<1x32xf32, #tpu.memory_space<vmem>>, vector<1x32xf32>
    %30 = vector.broadcast %29 : vector<1x32xf32> to vector<8x32xf32>
    %31 = arith.addf %28, %30 : vector<8x32xf32>
    %32 = arith.truncf %31 : vector<8x32xf32> to vector<8x32xbf16>
    %c0_12 = arith.constant 0 : index
    %c0_13 = arith.constant 0 : index
    %c0_14 = arith.constant 0 : index
    %33 = vector.load %arg6[%c0_12, %c0_13, %c0_14] : memref<1x8x32xbf16, #tpu.memory_space<vmem>>, vector<1x8x32xbf16>
    %34 = vector.shape_cast %33 : vector<1x8x32xbf16> to vector<8x32xbf16>
    %35 = vector.shape_cast %32 : vector<8x32xbf16> to vector<1x8x32xbf16>
    tpu.vector_store %arg6[%c0_12, %c0_13, %c0_14], %35 {strides = array<i32>} : memref<1x8x32xbf16, #tpu.memory_space<vmem>>, vector<1x8x32xbf16>,
    return
  }
  func.func @transform_0(%arg0: i32, %arg1: i32) -> (i32, i32, i32) {
    %c0_i32 = arith.constant 0 : i32
    %c0_i32_0 = arith.constant 0 : i32
    return %arg0, %arg1, %c0_i32 : i32, i32, i32
  }
  func.func @transform_1(%arg0: i32, %arg1: i32) -> (i32, i32) {
    %c0_i32 = arith.constant 0 : i32
    %c0_i32_0 = arith.constant 0 : i32
    return %arg1, %c0_i32 : i32, i32
  }
  func.func @transform_2(%arg0: i32, %arg1: i32) -> (i32, i32) {
    %c0_i32 = arith.constant 0 : i32
    %c0_i32_0 = arith.constant 0 : i32
    %c0_i32_1 = arith.constant 0 : i32
    return %c0_i32, %c0_i32_0 : i32, i32
  }
  func.func @transform_3(%arg0: i32, %arg1: i32) -> (i32, i32) {
    %c0_i32 = arith.constant 0 : i32
    %c0_i32_0 = arith.constant 0 : i32
    %c0_i32_1 = arith.constant 0 : i32
    return %c0_i32, %c0_i32_0 : i32, i32
  }
  func.func @transform_4(%arg0: i32, %arg1: i32) -> (i32, i32, i32) {
    %c0_i32 = arith.constant 0 : i32
    %c0_i32_0 = arith.constant 0 : i32
    return %arg0, %arg1, %c0_i32 : i32, i32, i32
  }
}

module attributes {stable_mosaic.version = 11 : i64} {
  func.func @_matmul_ln_kernel(%arg0: i32, %arg1: i32, %arg2: memref<16x32xbf16, #tpu.memory_space<vmem>>, %arg3: memref<32x32xbf16, #tpu.memory_space<vmem>>, %arg4: memref<1x32xf32, #tpu.memory_space<vmem>>, %arg5: memref<16x32xbf16, #tpu.memory_space<vmem>>, %arg6: memref<1x32xf32, #tpu.memory_space<vmem>>, %arg7: memref<1x32xf32, #tpu.memory_space<vmem>>, %arg8: memref<16x32xbf16, #tpu.memory_space<vmem>>, %arg9: memref<16x32xf32, #tpu.memory_space<vmem>>) attributes {dimension_semantics = [#tpu.dimension_semantics<parallel>, #tpu.dimension_semantics<arbitrary>], iteration_bounds = array<i64: 1, 1>, scalar_prefetch = 0 : i64, scratch_operands = 1 : i64, tpu.core_type = #tpu.core_type<tc>, window_params = [{transform_indices = @transform_0, window_bounds = array<i64: 16, 32>}, {transform_indices = @transform_1, window_bounds = array<i64: 32, 32>}, {pipeline_mode = #tpu.pipeline_mode<synchronous>, transform_indices = @transform_2, window_bounds = array<i64: 1, 32>}, {transform_indices = @transform_3, window_bounds = array<i64: 16, 32>}, {pipeline_mode = #tpu.pipeline_mode<synchronous>, transform_indices = @transform_4, window_bounds = array<i64: 1, 32>}, {pipeline_mode = #tpu.pipeline_mode<synchronous>, transform_indices = @transform_5, window_bounds = array<i64: 1, 32>}, {transform_indices = @transform_6, window_bounds = array<i64: 16, 32>}]} {
    %c0_i32 = arith.constant 0 : i32
    %0 = arith.cmpi eq, %arg1, %c0_i32 : i32
    %1 = arith.extui %0 : i1 to i32
    %c0_i32_0 = arith.constant 0 : i32
    %2 = arith.cmpi ne, %1, %c0_i32_0 : i32
    scf.if %2 {
      %cst_10 = arith.constant 0.000000e+00 : f32
      %12 = vector.broadcast %cst_10 : f32 to vector<16x32xf32>
      %c0_11 = arith.constant 0 : index
      %c0_12 = arith.constant 0 : index
      %13 = vector.load %arg9[%c0_11, %c0_12] : memref<16x32xf32, #tpu.memory_space<vmem>>, vector<16x32xf32>
      tpu.vector_store %arg9[%c0_11, %c0_12], %12 {strides = array<i32>} : memref<16x32xf32, #tpu.memory_space<vmem>>, vector<16x32xf32>,
    } else {
    }
    %c0 = arith.constant 0 : index
    %c0_1 = arith.constant 0 : index
    %3 = vector.load %arg9[%c0, %c0_1] : memref<16x32xf32, #tpu.memory_space<vmem>>, vector<16x32xf32>
    %c0_2 = arith.constant 0 : index
    %c0_3 = arith.constant 0 : index
    %4 = vector.load %arg2[%c0_2, %c0_3] : memref<16x32xbf16, #tpu.memory_space<vmem>>, vector<16x32xbf16>
    %c0_4 = arith.constant 0 : index
    %c0_5 = arith.constant 0 : index
    %5 = vector.load %arg3[%c0_4, %c0_5] : memref<32x32xbf16, #tpu.memory_space<vmem>>, vector<32x32xbf16>
    %cst = arith.constant dense<0.000000e+00> : vector<16x32xf32>
    %6 = tpu.matmul %4, %5, %cst {dimension_numbers = #tpu.dot_dimension_numbers<[1], [0], [0], [1], [0, 0, 1, 1], [], []>} : vector<16x32xbf16>, vector<32x32xbf16>, vector<16x32xf32> -> vector<16x32xf32>
    %7 = arith.addf %3, %6 : vector<16x32xf32>
    %c0_6 = arith.constant 0 : index
    %c0_7 = arith.constant 0 : index
    %8 = vector.load %arg9[%c0_6, %c0_7] : memref<16x32xf32, #tpu.memory_space<vmem>>, vector<16x32xf32>
    tpu.vector_store %arg9[%c0_6, %c0_7], %7 {strides = array<i32>} : memref<16x32xf32, #tpu.memory_space<vmem>>, vector<16x32xf32>,
    %c0_i32_8 = arith.constant 0 : i32
    %9 = arith.cmpi eq, %arg1, %c0_i32_8 : i32
    %10 = arith.extui %9 : i1 to i32
    %c0_i32_9 = arith.constant 0 : i32
    %11 = arith.cmpi ne, %10, %c0_i32_9 : i32
    scf.if %11 {
      %c0_10 = arith.constant 0 : index
      %c0_11 = arith.constant 0 : index
      %12 = vector.load %arg9[%c0_10, %c0_11] : memref<16x32xf32, #tpu.memory_space<vmem>>, vector<16x32xf32>
      %c0_12 = arith.constant 0 : index
      %c0_13 = arith.constant 0 : index
      %13 = vector.load %arg4[%c0_12, %c0_13] : memref<1x32xf32, #tpu.memory_space<vmem>>, vector<1x32xf32>
      %14 = vector.broadcast %13 : vector<1x32xf32> to vector<16x32xf32>
      %15 = arith.addf %12, %14 : vector<16x32xf32>
      %c0_14 = arith.constant 0 : index
      %c0_15 = arith.constant 0 : index
      %16 = vector.load %arg5[%c0_14, %c0_15] : memref<16x32xbf16, #tpu.memory_space<vmem>>, vector<16x32xbf16>
      %17 = arith.extf %16 : vector<16x32xbf16> to vector<16x32xf32>
      %18 = arith.addf %15, %17 : vector<16x32xf32>
      %cst_16 = arith.constant dense<0.000000e+00> : vector<16xf32>
      %19 = vector.multi_reduction <add>, %18, %cst_16 [1] : vector<16x32xf32> to vector<16xf32>
      %20 = vector.shape_cast %19 : vector<16xf32> to vector<16x1xf32>
      %cst_17 = arith.constant 3.200000e+01 : f32
      %21 = vector.broadcast %cst_17 : f32 to vector<16x1xf32>
      %22 = arith.divf %20, %21 : vector<16x1xf32>
      %23 = vector.broadcast %22 : vector<16x1xf32> to vector<16x32xf32>
      %24 = arith.subf %18, %23 : vector<16x32xf32>
      %25 = vector.broadcast %22 : vector<16x1xf32> to vector<16x32xf32>
      %26 = arith.subf %18, %25 : vector<16x32xf32>
      %27 = arith.mulf %24, %26 : vector<16x32xf32>
      %cst_18 = arith.constant dense<0.000000e+00> : vector<16xf32>
      %28 = vector.multi_reduction <add>, %27, %cst_18 [1] : vector<16x32xf32> to vector<16xf32>
      %29 = vector.shape_cast %28 : vector<16xf32> to vector<16x1xf32>
      %cst_19 = arith.constant 3.200000e+01 : f32
      %30 = vector.broadcast %cst_19 : f32 to vector<16x1xf32>
      %31 = arith.divf %29, %30 : vector<16x1xf32>
      %32 = vector.broadcast %22 : vector<16x1xf32> to vector<16x32xf32>
      %33 = arith.subf %18, %32 : vector<16x32xf32>
      %cst_20 = arith.constant 9.99999974E-6 : f32
      %34 = vector.broadcast %cst_20 : f32 to vector<16x1xf32>
      %35 = arith.addf %31, %34 : vector<16x1xf32>
      %36 = math.rsqrt %35 : vector<16x1xf32>
      %37 = vector.broadcast %36 : vector<16x1xf32> to vector<16x32xf32>
      %38 = arith.mulf %33, %37 : vector<16x32xf32>
      %c0_21 = arith.constant 0 : index
      %c0_22 = arith.constant 0 : index
      %39 = vector.load %arg6[%c0_21, %c0_22] : memref<1x32xf32, #tpu.memory_space<vmem>>, vector<1x32xf32>
      %40 = vector.broadcast %39 : vector<1x32xf32> to vector<16x32xf32>
      %41 = arith.mulf %38, %40 : vector<16x32xf32>
      %c0_23 = arith.constant 0 : index
      %c0_24 = arith.constant 0 : index
      %42 = vector.load %arg7[%c0_23, %c0_24] : memref<1x32xf32, #tpu.memory_space<vmem>>, vector<1x32xf32>
      %43 = vector.broadcast %42 : vector<1x32xf32> to vector<16x32xf32>
      %44 = arith.addf %41, %43 : vector<16x32xf32>
      %45 = arith.truncf %44 : vector<16x32xf32> to vector<16x32xbf16>
      %c0_25 = arith.constant 0 : index
      %c0_26 = arith.constant 0 : index
      %46 = vector.load %arg8[%c0_25, %c0_26] : memref<16x32xbf16, #tpu.memory_space<vmem>>, vector<16x32xbf16>
      tpu.vector_store %arg8[%c0_25, %c0_26], %45 {strides = array<i32>} : memref<16x32xbf16, #tpu.memory_space<vmem>>, vector<16x32xbf16>,
    } else {
    }
    return
  }
  func.func @transform_0(%arg0: i32, %arg1: i32) -> (i32, i32) {
    %c0_i32 = arith.constant 0 : i32
    return %arg0, %arg1 : i32, i32
  }
  func.func @transform_1(%arg0: i32, %arg1: i32) -> (i32, i32) {
    %c0_i32 = arith.constant 0 : i32
    %c0_i32_0 = arith.constant 0 : i32
    return %arg1, %c0_i32 : i32, i32
  }
  func.func @transform_2(%arg0: i32, %arg1: i32) -> (i32, i32) {
    %c0_i32 = arith.constant 0 : i32
    %c0_i32_0 = arith.constant 0 : i32
    %c0_i32_1 = arith.constant 0 : i32
    return %c0_i32, %c0_i32_0 : i32, i32
  }
  func.func @transform_3(%arg0: i32, %arg1: i32) -> (i32, i32) {
    %c0_i32 = arith.constant 0 : i32
    %c0_i32_0 = arith.constant 0 : i32
    return %arg0, %c0_i32 : i32, i32
  }
  func.func @transform_4(%arg0: i32, %arg1: i32) -> (i32, i32) {
    %c0_i32 = arith.constant 0 : i32
    %c0_i32_0 = arith.constant 0 : i32
    %c0_i32_1 = arith.constant 0 : i32
    return %c0_i32, %c0_i32_0 : i32, i32
  }
  func.func @transform_5(%arg0: i32, %arg1: i32) -> (i32, i32) {
    %c0_i32 = arith.constant 0 : i32
    %c0_i32_0 = arith.constant 0 : i32
    %c0_i32_1 = arith.constant 0 : i32
    return %c0_i32, %c0_i32_0 : i32, i32
  }
  func.func @transform_6(%arg0: i32, %arg1: i32) -> (i32, i32) {
    %c0_i32 = arith.constant 0 : i32
    %c0_i32_0 = arith.constant 0 : i32
    return %arg0, %c0_i32 : i32, i32
  }
}

module attributes {stable_mosaic.version = 11 : i64} {
  func.func @_matmul_bias_kernel(%arg0: i32, %arg1: i32, %arg2: i32, %arg3: memref<16x32xbf16, #tpu.memory_space<vmem>>, %arg4: memref<32x96xbf16, #tpu.memory_space<vmem>>, %arg5: memref<1x96xf32, #tpu.memory_space<vmem>>, %arg6: memref<16x96xbf16, #tpu.memory_space<vmem>>, %arg7: memref<16x96xf32, #tpu.memory_space<vmem>>) attributes {dimension_semantics = [#tpu.dimension_semantics<parallel>, #tpu.dimension_semantics<parallel>, #tpu.dimension_semantics<arbitrary>], iteration_bounds = array<i64: 1, 1, 1>, scalar_prefetch = 0 : i64, scratch_operands = 1 : i64, tpu.core_type = #tpu.core_type<tc>, window_params = [{transform_indices = @transform_0, window_bounds = array<i64: 16, 32>}, {transform_indices = @transform_1, window_bounds = array<i64: 32, 96>}, {transform_indices = @transform_2, window_bounds = array<i64: 1, 96>}, {transform_indices = @transform_3, window_bounds = array<i64: 16, 96>}]} {
    %c0_i32 = arith.constant 0 : i32
    %0 = arith.cmpi eq, %arg2, %c0_i32 : i32
    %1 = arith.extui %0 : i1 to i32
    %c0_i32_0 = arith.constant 0 : i32
    %2 = arith.cmpi ne, %1, %c0_i32_0 : i32
    scf.if %2 {
      %cst_10 = arith.constant 0.000000e+00 : f32
      %12 = vector.broadcast %cst_10 : f32 to vector<16x96xf32>
      %c0_11 = arith.constant 0 : index
      %c0_12 = arith.constant 0 : index
      %13 = vector.load %arg7[%c0_11, %c0_12] : memref<16x96xf32, #tpu.memory_space<vmem>>, vector<16x96xf32>
      tpu.vector_store %arg7[%c0_11, %c0_12], %12 {strides = array<i32>} : memref<16x96xf32, #tpu.memory_space<vmem>>, vector<16x96xf32>,
    } else {
    }
    %c0 = arith.constant 0 : index
    %c0_1 = arith.constant 0 : index
    %3 = vector.load %arg7[%c0, %c0_1] : memref<16x96xf32, #tpu.memory_space<vmem>>, vector<16x96xf32>
    %c0_2 = arith.constant 0 : index
    %c0_3 = arith.constant 0 : index
    %4 = vector.load %arg3[%c0_2, %c0_3] : memref<16x32xbf16, #tpu.memory_space<vmem>>, vector<16x32xbf16>
    %c0_4 = arith.constant 0 : index
    %c0_5 = arith.constant 0 : index
    %5 = vector.load %arg4[%c0_4, %c0_5] : memref<32x96xbf16, #tpu.memory_space<vmem>>, vector<32x96xbf16>
    %cst = arith.constant dense<0.000000e+00> : vector<16x96xf32>
    %6 = tpu.matmul %4, %5, %cst {dimension_numbers = #tpu.dot_dimension_numbers<[1], [0], [0], [1], [0, 0, 1, 1], [], []>} : vector<16x32xbf16>, vector<32x96xbf16>, vector<16x96xf32> -> vector<16x96xf32>
    %7 = arith.addf %3, %6 : vector<16x96xf32>
    %c0_6 = arith.constant 0 : index
    %c0_7 = arith.constant 0 : index
    %8 = vector.load %arg7[%c0_6, %c0_7] : memref<16x96xf32, #tpu.memory_space<vmem>>, vector<16x96xf32>
    tpu.vector_store %arg7[%c0_6, %c0_7], %7 {strides = array<i32>} : memref<16x96xf32, #tpu.memory_space<vmem>>, vector<16x96xf32>,
    %c0_i32_8 = arith.constant 0 : i32
    %9 = arith.cmpi eq, %arg2, %c0_i32_8 : i32
    %10 = arith.extui %9 : i1 to i32
    %c0_i32_9 = arith.constant 0 : i32
    %11 = arith.cmpi ne, %10, %c0_i32_9 : i32
    scf.if %11 {
      %c0_10 = arith.constant 0 : index
      %c0_11 = arith.constant 0 : index
      %12 = vector.load %arg7[%c0_10, %c0_11] : memref<16x96xf32, #tpu.memory_space<vmem>>, vector<16x96xf32>
      %c0_12 = arith.constant 0 : index
      %c0_13 = arith.constant 0 : index
      %13 = vector.load %arg5[%c0_12, %c0_13] : memref<1x96xf32, #tpu.memory_space<vmem>>, vector<1x96xf32>
      %14 = vector.broadcast %13 : vector<1x96xf32> to vector<16x96xf32>
      %15 = arith.addf %12, %14 : vector<16x96xf32>
      %16 = arith.truncf %15 : vector<16x96xf32> to vector<16x96xbf16>
      %c0_14 = arith.constant 0 : index
      %c0_15 = arith.constant 0 : index
      %17 = vector.load %arg6[%c0_14, %c0_15] : memref<16x96xbf16, #tpu.memory_space<vmem>>, vector<16x96xbf16>
      tpu.vector_store %arg6[%c0_14, %c0_15], %16 {strides = array<i32>} : memref<16x96xbf16, #tpu.memory_space<vmem>>, vector<16x96xbf16>,
    } else {
    }
    return
  }
  func.func @transform_0(%arg0: i32, %arg1: i32, %arg2: i32) -> (i32, i32) {
    %c0_i32 = arith.constant 0 : i32
    return %arg0, %arg2 : i32, i32
  }
  func.func @transform_1(%arg0: i32, %arg1: i32, %arg2: i32) -> (i32, i32) {
    %c0_i32 = arith.constant 0 : i32
    return %arg2, %arg1 : i32, i32
  }
  func.func @transform_2(%arg0: i32, %arg1: i32, %arg2: i32) -> (i32, i32) {
    %c0_i32 = arith.constant 0 : i32
    %c0_i32_0 = arith.constant 0 : i32
    return %c0_i32, %arg1 : i32, i32
  }
  func.func @transform_3(%arg0: i32, %arg1: i32, %arg2: i32) -> (i32, i32) {
    %c0_i32 = arith.constant 0 : i32
    return %arg0, %arg1 : i32, i32
  }
}

module attributes {stable_mosaic.version = 11 : i64} {
  func.func @_attention_kernel(%arg0: i32, %arg1: i32, %arg2: i32, %arg3: memref<1x8x32xbf16, #tpu.memory_space<vmem>>, %arg4: memref<1x8x32xbf16, #tpu.memory_space<vmem>>, %arg5: memref<1x8x32xbf16, #tpu.memory_space<vmem>>, %arg6: memref<1x8x32xbf16, #tpu.memory_space<vmem>>) attributes {dimension_semantics = [#tpu.dimension_semantics<parallel>, #tpu.dimension_semantics<parallel>, #tpu.dimension_semantics<parallel>], iteration_bounds = array<i64: 2, 1, 1>, scalar_prefetch = 0 : i64, scratch_operands = 0 : i64, tpu.core_type = #tpu.core_type<tc>, window_params = [{transform_indices = @transform_0, window_bounds = array<i64: 1, 8, 32>}, {transform_indices = @transform_1, window_bounds = array<i64: 1, 8, 32>}, {transform_indices = @transform_2, window_bounds = array<i64: 1, 8, 32>}, {transform_indices = @transform_3, window_bounds = array<i64: 1, 8, 32>}]} {
    %c0 = arith.constant 0 : index
    %c0_0 = arith.constant 0 : index
    %c0_1 = arith.constant 0 : index
    %0 = vector.load %arg3[%c0, %c0_0, %c0_1] : memref<1x8x32xbf16, #tpu.memory_space<vmem>>, vector<1x8x32xbf16>
    %1 = vector.shape_cast %0 : vector<1x8x32xbf16> to vector<8x32xbf16>
    %2 = arith.extf %1 : vector<8x32xbf16> to vector<8x32xf32>
    %cst = arith.constant 0.353553385 : f32
    %3 = vector.broadcast %cst : f32 to vector<8x32xf32>
    %4 = arith.mulf %2, %3 : vector<8x32xf32>
    %5 = arith.truncf %4 : vector<8x32xf32> to vector<8x32xbf16>
    %c0_2 = arith.constant 0 : index
    %c0_3 = arith.constant 0 : index
    %c0_4 = arith.constant 0 : index
    %6 = vector.load %arg4[%c0_2, %c0_3, %c0_4] : memref<1x8x32xbf16, #tpu.memory_space<vmem>>, vector<1x8x32xbf16>
    %7 = vector.shape_cast %6 : vector<1x8x32xbf16> to vector<8x32xbf16>
    %c0_5 = arith.constant 0 : index
    %c0_6 = arith.constant 0 : index
    %c0_7 = arith.constant 0 : index
    %8 = vector.load %arg5[%c0_5, %c0_6, %c0_7] : memref<1x8x32xbf16, #tpu.memory_space<vmem>>, vector<1x8x32xbf16>
    %9 = vector.shape_cast %8 : vector<1x8x32xbf16> to vector<8x32xbf16>
    %10 = vector.extract_strided_slice %5 {offsets = [0, 0], sizes = [8, 8], strides = [1, 1]} : vector<8x32xbf16> to vector<8x8xbf16>
    %11 = vector.extract_strided_slice %7 {offsets = [0, 0], sizes = [8, 8], strides = [1, 1]} : vector<8x32xbf16> to vector<8x8xbf16>
    %cst_8 = arith.constant dense<0.000000e+00> : vector<8x8xf32>
    %12 = tpu.matmul %10, %11, %cst_8 {dimension_numbers = #tpu.dot_dimension_numbers<[1], [1], [0], [0], [0, 0, 1, 0], [], []>} : vector<8x8xbf16>, vector<8x8xbf16>, vector<8x8xf32> -> vector<8x8xf32>
    %cst_9 = arith.constant dense<0xFF800000> : vector<8xf32>
    %13 = vector.multi_reduction <maximumf>, %12, %cst_9 [1] : vector<8x8xf32> to vector<8xf32>
    %14 = vector.shape_cast %13 : vector<8xf32> to vector<8x1xf32>
    %15 = vector.broadcast %14 : vector<8x1xf32> to vector<8x8xf32>
    %16 = arith.subf %12, %15 : vector<8x8xf32>
    %17 = math.exp %16 : vector<8x8xf32>
    %cst_10 = arith.constant dense<0.000000e+00> : vector<8xf32>
    %18 = vector.multi_reduction <add>, %17, %cst_10 [1] : vector<8x8xf32> to vector<8xf32>
    %19 = vector.shape_cast %18 : vector<8xf32> to vector<8x1xf32>
    %20 = tpu.reciprocal %19 {approx = true} : vector<8x1xf32> -> vector<8x1xf32>
    %21 = vector.broadcast %20 : vector<8x1xf32> to vector<8x8xf32>
    %22 = arith.mulf %17, %21 : vector<8x8xf32>
    %23 = arith.truncf %22 : vector<8x8xf32> to vector<8x8xbf16>
    %24 = vector.extract_strided_slice %9 {offsets = [0, 0], sizes = [8, 8], strides = [1, 1]} : vector<8x32xbf16> to vector<8x8xbf16>
    %cst_11 = arith.constant dense<0.000000e+00> : vector<8x8xf32>
    %25 = tpu.matmul %23, %24, %cst_11 {dimension_numbers = #tpu.dot_dimension_numbers<[1], [0], [0], [1], [0, 0, 1, 1], [], []>} : vector<8x8xbf16>, vector<8x8xbf16>, vector<8x8xf32> -> vector<8x8xf32>
    %26 = vector.extract_strided_slice %5 {offsets = [0, 8], sizes = [8, 8], strides = [1, 1]} : vector<8x32xbf16> to vector<8x8xbf16>
    %27 = vector.extract_strided_slice %7 {offsets = [0, 8], sizes = [8, 8], strides = [1, 1]} : vector<8x32xbf16> to vector<8x8xbf16>
    %cst_12 = arith.constant dense<0.000000e+00> : vector<8x8xf32>
    %28 = tpu.matmul %26, %27, %cst_12 {dimension_numbers = #tpu.dot_dimension_numbers<[1], [1], [0], [0], [0, 0, 1, 0], [], []>} : vector<8x8xbf16>, vector<8x8xbf16>, vector<8x8xf32> -> vector<8x8xf32>
    %cst_13 = arith.constant dense<0xFF800000> : vector<8xf32>
    %29 = vector.multi_reduction <maximumf>, %28, %cst_13 [1] : vector<8x8xf32> to vector<8xf32>
    %30 = vector.shape_cast %29 : vector<8xf32> to vector<8x1xf32>
    %31 = vector.broadcast %30 : vector<8x1xf32> to vector<8x8xf32>
    %32 = arith.subf %28, %31 : vector<8x8xf32>
    %33 = math.exp %32 : vector<8x8xf32>
    %cst_14 = arith.constant dense<0.000000e+00> : vector<8xf32>
    %34 = vector.multi_reduction <add>, %33, %cst_14 [1] : vector<8x8xf32> to vector<8xf32>
    %35 = vector.shape_cast %34 : vector<8xf32> to vector<8x1xf32>
    %36 = tpu.reciprocal %35 {approx = true} : vector<8x1xf32> -> vector<8x1xf32>
    %37 = vector.broadcast %36 : vector<8x1xf32> to vector<8x8xf32>
    %38 = arith.mulf %33, %37 : vector<8x8xf32>
    %39 = arith.truncf %38 : vector<8x8xf32> to vector<8x8xbf16>
    %40 = vector.extract_strided_slice %9 {offsets = [0, 8], sizes = [8, 8], strides = [1, 1]} : vector<8x32xbf16> to vector<8x8xbf16>
    %cst_15 = arith.constant dense<0.000000e+00> : vector<8x8xf32>
    %41 = tpu.matmul %39, %40, %cst_15 {dimension_numbers = #tpu.dot_dimension_numbers<[1], [0], [0], [1], [0, 0, 1, 1], [], []>} : vector<8x8xbf16>, vector<8x8xbf16>, vector<8x8xf32> -> vector<8x8xf32>
    %42 = vector.extract_strided_slice %5 {offsets = [0, 16], sizes = [8, 8], strides = [1, 1]} : vector<8x32xbf16> to vector<8x8xbf16>
    %43 = vector.extract_strided_slice %7 {offsets = [0, 16], sizes = [8, 8], strides = [1, 1]} : vector<8x32xbf16> to vector<8x8xbf16>
    %cst_16 = arith.constant dense<0.000000e+00> : vector<8x8xf32>
    %44 = tpu.matmul %42, %43, %cst_16 {dimension_numbers = #tpu.dot_dimension_numbers<[1], [1], [0], [0], [0, 0, 1, 0], [], []>} : vector<8x8xbf16>, vector<8x8xbf16>, vector<8x8xf32> -> vector<8x8xf32>
    %cst_17 = arith.constant dense<0xFF800000> : vector<8xf32>
    %45 = vector.multi_reduction <maximumf>, %44, %cst_17 [1] : vector<8x8xf32> to vector<8xf32>
    %46 = vector.shape_cast %45 : vector<8xf32> to vector<8x1xf32>
    %47 = vector.broadcast %46 : vector<8x1xf32> to vector<8x8xf32>
    %48 = arith.subf %44, %47 : vector<8x8xf32>
    %49 = math.exp %48 : vector<8x8xf32>
    %cst_18 = arith.constant dense<0.000000e+00> : vector<8xf32>
    %50 = vector.multi_reduction <add>, %49, %cst_18 [1] : vector<8x8xf32> to vector<8xf32>
    %51 = vector.shape_cast %50 : vector<8xf32> to vector<8x1xf32>
    %52 = tpu.reciprocal %51 {approx = true} : vector<8x1xf32> -> vector<8x1xf32>
    %53 = vector.broadcast %52 : vector<8x1xf32> to vector<8x8xf32>
    %54 = arith.mulf %49, %53 : vector<8x8xf32>
    %55 = arith.truncf %54 : vector<8x8xf32> to vector<8x8xbf16>
    %56 = vector.extract_strided_slice %9 {offsets = [0, 16], sizes = [8, 8], strides = [1, 1]} : vector<8x32xbf16> to vector<8x8xbf16>
    %cst_19 = arith.constant dense<0.000000e+00> : vector<8x8xf32>
    %57 = tpu.matmul %55, %56, %cst_19 {dimension_numbers = #tpu.dot_dimension_numbers<[1], [0], [0], [1], [0, 0, 1, 1], [], []>} : vector<8x8xbf16>, vector<8x8xbf16>, vector<8x8xf32> -> vector<8x8xf32>
    %58 = vector.extract_strided_slice %5 {offsets = [0, 24], sizes = [8, 8], strides = [1, 1]} : vector<8x32xbf16> to vector<8x8xbf16>
    %59 = vector.extract_strided_slice %7 {offsets = [0, 24], sizes = [8, 8], strides = [1, 1]} : vector<8x32xbf16> to vector<8x8xbf16>
    %cst_20 = arith.constant dense<0.000000e+00> : vector<8x8xf32>
    %60 = tpu.matmul %58, %59, %cst_20 {dimension_numbers = #tpu.dot_dimension_numbers<[1], [1], [0], [0], [0, 0, 1, 0], [], []>} : vector<8x8xbf16>, vector<8x8xbf16>, vector<8x8xf32> -> vector<8x8xf32>
    %cst_21 = arith.constant dense<0xFF800000> : vector<8xf32>
    %61 = vector.multi_reduction <maximumf>, %60, %cst_21 [1] : vector<8x8xf32> to vector<8xf32>
    %62 = vector.shape_cast %61 : vector<8xf32> to vector<8x1xf32>
    %63 = vector.broadcast %62 : vector<8x1xf32> to vector<8x8xf32>
    %64 = arith.subf %60, %63 : vector<8x8xf32>
    %65 = math.exp %64 : vector<8x8xf32>
    %cst_22 = arith.constant dense<0.000000e+00> : vector<8xf32>
    %66 = vector.multi_reduction <add>, %65, %cst_22 [1] : vector<8x8xf32> to vector<8xf32>
    %67 = vector.shape_cast %66 : vector<8xf32> to vector<8x1xf32>
    %68 = tpu.reciprocal %67 {approx = true} : vector<8x1xf32> -> vector<8x1xf32>
    %69 = vector.broadcast %68 : vector<8x1xf32> to vector<8x8xf32>
    %70 = arith.mulf %65, %69 : vector<8x8xf32>
    %71 = arith.truncf %70 : vector<8x8xf32> to vector<8x8xbf16>
    %72 = vector.extract_strided_slice %9 {offsets = [0, 24], sizes = [8, 8], strides = [1, 1]} : vector<8x32xbf16> to vector<8x8xbf16>
    %cst_23 = arith.constant dense<0.000000e+00> : vector<8x8xf32>
    %73 = tpu.matmul %71, %72, %cst_23 {dimension_numbers = #tpu.dot_dimension_numbers<[1], [0], [0], [1], [0, 0, 1, 1], [], []>} : vector<8x8xbf16>, vector<8x8xbf16>, vector<8x8xf32> -> vector<8x8xf32>
    %74 = tpu.concatenate %25, %41, %57, %73 in 1 : vector<8x8xf32>, vector<8x8xf32>, vector<8x8xf32>, vector<8x8xf32> -> vector<8x32xf32>
    %75 = arith.truncf %74 : vector<8x32xf32> to vector<8x32xbf16>
    %c0_24 = arith.constant 0 : index
    %c0_25 = arith.constant 0 : index
    %c0_26 = arith.constant 0 : index
    %76 = vector.load %arg6[%c0_24, %c0_25, %c0_26] : memref<1x8x32xbf16, #tpu.memory_space<vmem>>, vector<1x8x32xbf16>
    %77 = vector.shape_cast %76 : vector<1x8x32xbf16> to vector<8x32xbf16>
    %78 = vector.shape_cast %75 : vector<8x32xbf16> to vector<1x8x32xbf16>
    tpu.vector_store %arg6[%c0_24, %c0_25, %c0_26], %78 {strides = array<i32>} : memref<1x8x32xbf16, #tpu.memory_space<vmem>>, vector<1x8x32xbf16>,
    return
  }
  func.func @transform_0(%arg0: i32, %arg1: i32, %arg2: i32) -> (i32, i32, i32) {
    %c0_i32 = arith.constant 0 : i32
    return %arg0, %arg1, %arg2 : i32, i32, i32
  }
  func.func @transform_1(%arg0: i32, %arg1: i32, %arg2: i32) -> (i32, i32, i32) {
    %c0_i32 = arith.constant 0 : i32
    %c0_i32_0 = arith.constant 0 : i32
    return %arg0, %c0_i32, %arg2 : i32, i32, i32
  }
  func.func @transform_2(%arg0: i32, %arg1: i32, %arg2: i32) -> (i32, i32, i32) {
    %c0_i32 = arith.constant 0 : i32
    %c0_i32_0 = arith.constant 0 : i32
    return %arg0, %c0_i32, %arg2 : i32, i32, i32
  }
  func.func @transform_3(%arg0: i32, %arg1: i32, %arg2: i32) -> (i32, i32, i32) {
    %c0_i32 = arith.constant 0 : i32
    return %arg0, %arg1, %arg2 : i32, i32, i32
  }
}

module attributes {stable_mosaic.version = 11 : i64} {
  func.func @_matmul_bias_kernel(%arg0: i32, %arg1: i32, %arg2: i32, %arg3: memref<16x32xbf16, #tpu.memory_space<vmem>>, %arg4: memref<32x64xbf16, #tpu.memory_space<vmem>>, %arg5: memref<1x64xf32, #tpu.memory_space<vmem>>, %arg6: memref<16x64xbf16, #tpu.memory_space<vmem>>, %arg7: memref<16x64xf32, #tpu.memory_space<vmem>>) attributes {dimension_semantics = [#tpu.dimension_semantics<parallel>, #tpu.dimension_semantics<parallel>, #tpu.dimension_semantics<arbitrary>], iteration_bounds = array<i64: 1, 1, 1>, scalar_prefetch = 0 : i64, scratch_operands = 1 : i64, tpu.core_type = #tpu.core_type<tc>, window_params = [{transform_indices = @transform_0, window_bounds = array<i64: 16, 32>}, {transform_indices = @transform_1, window_bounds = array<i64: 32, 64>}, {transform_indices = @transform_2, window_bounds = array<i64: 1, 64>}, {transform_indices = @transform_3, window_bounds = array<i64: 16, 64>}]} {
    %c0_i32 = arith.constant 0 : i32
    %0 = arith.cmpi eq, %arg2, %c0_i32 : i32
    %1 = arith.extui %0 : i1 to i32
    %c0_i32_0 = arith.constant 0 : i32
    %2 = arith.cmpi ne, %1, %c0_i32_0 : i32
    scf.if %2 {
      %cst_10 = arith.constant 0.000000e+00 : f32
      %12 = vector.broadcast %cst_10 : f32 to vector<16x64xf32>
      %c0_11 = arith.constant 0 : index
      %c0_12 = arith.constant 0 : index
      %13 = vector.load %arg7[%c0_11, %c0_12] : memref<16x64xf32, #tpu.memory_space<vmem>>, vector<16x64xf32>
      tpu.vector_store %arg7[%c0_11, %c0_12], %12 {strides = array<i32>} : memref<16x64xf32, #tpu.memory_space<vmem>>, vector<16x64xf32>,
    } else {
    }
    %c0 = arith.constant 0 : index
    %c0_1 = arith.constant 0 : index
    %3 = vector.load %arg7[%c0, %c0_1] : memref<16x64xf32, #tpu.memory_space<vmem>>, vector<16x64xf32>
    %c0_2 = arith.constant 0 : index
    %c0_3 = arith.constant 0 : index
    %4 = vector.load %arg3[%c0_2, %c0_3] : memref<16x32xbf16, #tpu.memory_space<vmem>>, vector<16x32xbf16>
    %c0_4 = arith.constant 0 : index
    %c0_5 = arith.constant 0 : index
    %5 = vector.load %arg4[%c0_4, %c0_5] : memref<32x64xbf16, #tpu.memory_space<vmem>>, vector<32x64xbf16>
    %cst = arith.constant dense<0.000000e+00> : vector<16x64xf32>
    %6 = tpu.matmul %4, %5, %cst {dimension_numbers = #tpu.dot_dimension_numbers<[1], [0], [0], [1], [0, 0, 1, 1], [], []>} : vector<16x32xbf16>, vector<32x64xbf16>, vector<16x64xf32> -> vector<16x64xf32>
    %7 = arith.addf %3, %6 : vector<16x64xf32>
    %c0_6 = arith.constant 0 : index
    %c0_7 = arith.constant 0 : index
    %8 = vector.load %arg7[%c0_6, %c0_7] : memref<16x64xf32, #tpu.memory_space<vmem>>, vector<16x64xf32>
    tpu.vector_store %arg7[%c0_6, %c0_7], %7 {strides = array<i32>} : memref<16x64xf32, #tpu.memory_space<vmem>>, vector<16x64xf32>,
    %c0_i32_8 = arith.constant 0 : i32
    %9 = arith.cmpi eq, %arg2, %c0_i32_8 : i32
    %10 = arith.extui %9 : i1 to i32
    %c0_i32_9 = arith.constant 0 : i32
    %11 = arith.cmpi ne, %10, %c0_i32_9 : i32
    scf.if %11 {
      %c0_10 = arith.constant 0 : index
      %c0_11 = arith.constant 0 : index
      %12 = vector.load %arg7[%c0_10, %c0_11] : memref<16x64xf32, #tpu.memory_space<vmem>>, vector<16x64xf32>
      %c0_12 = arith.constant 0 : index
      %c0_13 = arith.constant 0 : index
      %13 = vector.load %arg5[%c0_12, %c0_13] : memref<1x64xf32, #tpu.memory_space<vmem>>, vector<1x64xf32>
      %14 = vector.broadcast %13 : vector<1x64xf32> to vector<16x64xf32>
      %15 = arith.addf %12, %14 : vector<16x64xf32>
      %cst_14 = arith.constant 5.000000e-01 : f32
      %16 = vector.broadcast %cst_14 : f32 to vector<16x64xf32>
      %17 = arith.mulf %16, %15 : vector<16x64xf32>
      %cst_15 = arith.constant 0.707106769 : f32
      %18 = vector.broadcast %cst_15 : f32 to vector<16x64xf32>
      %19 = arith.mulf %15, %18 : vector<16x64xf32>
      %20 = math.erf %19 : vector<16x64xf32>
      %cst_16 = arith.constant 1.000000e+00 : f32
      %21 = vector.broadcast %cst_16 : f32 to vector<16x64xf32>
      %22 = arith.addf %21, %20 : vector<16x64xf32>
      %23 = arith.mulf %17, %22 : vector<16x64xf32>
      %24 = arith.truncf %23 : vector<16x64xf32> to vector<16x64xbf16>
      %c0_17 = arith.constant 0 : index
      %c0_18 = arith.constant 0 : index
      %25 = vector.load %arg6[%c0_17, %c0_18] : memref<16x64xbf16, #tpu.memory_space<vmem>>, vector<16x64xbf16>
      tpu.vector_store %arg6[%c0_17, %c0_18], %24 {strides = array<i32>} : memref<16x64xbf16, #tpu.memory_space<vmem>>, vector<16x64xbf16>,
    } else {
    }
    return
  }
  func.func @transform_0(%arg0: i32, %arg1: i32, %arg2: i32) -> (i32, i32) {
    %c0_i32 = arith.constant 0 : i32
    return %arg0, %arg2 : i32, i32
  }
  func.func @transform_1(%arg0: i32, %arg1: i32, %arg2: i32) -> (i32, i32) {
    %c0_i32 = arith.constant 0 : i32
    return %arg2, %arg1 : i32, i32
  }
  func.func @transform_2(%arg0: i32, %arg1: i32, %arg2: i32) -> (i32, i32) {
    %c0_i32 = arith.constant 0 : i32
    %c0_i32_0 = arith.constant 0 : i32
    return %c0_i32, %arg1 : i32, i32
  }
  func.func @transform_3(%arg0: i32, %arg1: i32, %arg2: i32) -> (i32, i32) {
    %c0_i32 = arith.constant 0 : i32
    return %arg0, %arg1 : i32, i32
  }
}

module attributes {stable_mosaic.version = 11 : i64} {
  func.func @_matmul_ln_kernel(%arg0: i32, %arg1: i32, %arg2: memref<16x64xbf16, #tpu.memory_space<vmem>>, %arg3: memref<64x32xbf16, #tpu.memory_space<vmem>>, %arg4: memref<1x32xf32, #tpu.memory_space<vmem>>, %arg5: memref<16x32xbf16, #tpu.memory_space<vmem>>, %arg6: memref<1x32xf32, #tpu.memory_space<vmem>>, %arg7: memref<1x32xf32, #tpu.memory_space<vmem>>, %arg8: memref<16x32xbf16, #tpu.memory_space<vmem>>, %arg9: memref<16x32xf32, #tpu.memory_space<vmem>>) attributes {dimension_semantics = [#tpu.dimension_semantics<parallel>, #tpu.dimension_semantics<arbitrary>], iteration_bounds = array<i64: 1, 1>, scalar_prefetch = 0 : i64, scratch_operands = 1 : i64, tpu.core_type = #tpu.core_type<tc>, window_params = [{transform_indices = @transform_0, window_bounds = array<i64: 16, 64>}, {transform_indices = @transform_1, window_bounds = array<i64: 64, 32>}, {pipeline_mode = #tpu.pipeline_mode<synchronous>, transform_indices = @transform_2, window_bounds = array<i64: 1, 32>}, {transform_indices = @transform_3, window_bounds = array<i64: 16, 32>}, {pipeline_mode = #tpu.pipeline_mode<synchronous>, transform_indices = @transform_4, window_bounds = array<i64: 1, 32>}, {pipeline_mode = #tpu.pipeline_mode<synchronous>, transform_indices = @transform_5, window_bounds = array<i64: 1, 32>}, {transform_indices = @transform_6, window_bounds = array<i64: 16, 32>}]} {
    %c0_i32 = arith.constant 0 : i32
    %0 = arith.cmpi eq, %arg1, %c0_i32 : i32
    %1 = arith.extui %0 : i1 to i32
    %c0_i32_0 = arith.constant 0 : i32
    %2 = arith.cmpi ne, %1, %c0_i32_0 : i32
    scf.if %2 {
      %cst_10 = arith.constant 0.000000e+00 : f32
      %12 = vector.broadcast %cst_10 : f32 to vector<16x32xf32>
      %c0_11 = arith.constant 0 : index
      %c0_12 = arith.constant 0 : index
      %13 = vector.load %arg9[%c0_11, %c0_12] : memref<16x32xf32, #tpu.memory_space<vmem>>, vector<16x32xf32>
      tpu.vector_store %arg9[%c0_11, %c0_12], %12 {strides = array<i32>} : memref<16x32xf32, #tpu.memory_space<vmem>>, vector<16x32xf32>,
    } else {
    }
    %c0 = arith.constant 0 : index
    %c0_1 = arith.constant 0 : index
    %3 = vector.load %arg9[%c0, %c0_1] : memref<16x32xf32, #tpu.memory_space<vmem>>, vector<16x32xf32>
    %c0_2 = arith.constant 0 : index
    %c0_3 = arith.constant 0 : index
    %4 = vector.load %arg2[%c0_2, %c0_3] : memref<16x64xbf16, #tpu.memory_space<vmem>>, vector<16x64xbf16>
    %c0_4 = arith.constant 0 : index
    %c0_5 = arith.constant 0 : index
    %5 = vector.load %arg3[%c0_4, %c0_5] : memref<64x32xbf16, #tpu.memory_space<vmem>>, vector<64x32xbf16>
    %cst = arith.constant dense<0.000000e+00> : vector<16x32xf32>
    %6 = tpu.matmul %4, %5, %cst {dimension_numbers = #tpu.dot_dimension_numbers<[1], [0], [0], [1], [0, 0, 1, 1], [], []>} : vector<16x64xbf16>, vector<64x32xbf16>, vector<16x32xf32> -> vector<16x32xf32>
    %7 = arith.addf %3, %6 : vector<16x32xf32>
    %c0_6 = arith.constant 0 : index
    %c0_7 = arith.constant 0 : index
    %8 = vector.load %arg9[%c0_6, %c0_7] : memref<16x32xf32, #tpu.memory_space<vmem>>, vector<16x32xf32>
    tpu.vector_store %arg9[%c0_6, %c0_7], %7 {strides = array<i32>} : memref<16x32xf32, #tpu.memory_space<vmem>>, vector<16x32xf32>,
    %c0_i32_8 = arith.constant 0 : i32
    %9 = arith.cmpi eq, %arg1, %c0_i32_8 : i32
    %10 = arith.extui %9 : i1 to i32
    %c0_i32_9 = arith.constant 0 : i32
    %11 = arith.cmpi ne, %10, %c0_i32_9 : i32
    scf.if %11 {
      %c0_10 = arith.constant 0 : index
      %c0_11 = arith.constant 0 : index
      %12 = vector.load %arg9[%c0_10, %c0_11] : memref<16x32xf32, #tpu.memory_space<vmem>>, vector<16x32xf32>
      %c0_12 = arith.constant 0 : index
      %c0_13 = arith.constant 0 : index
      %13 = vector.load %arg4[%c0_12, %c0_13] : memref<1x32xf32, #tpu.memory_space<vmem>>, vector<1x32xf32>
      %14 = vector.broadcast %13 : vector<1x32xf32> to vector<16x32xf32>
      %15 = arith.addf %12, %14 : vector<16x32xf32>
      %c0_14 = arith.constant 0 : index
      %c0_15 = arith.constant 0 : index
      %16 = vector.load %arg5[%c0_14, %c0_15] : memref<16x32xbf16, #tpu.memory_space<vmem>>, vector<16x32xbf16>
      %17 = arith.extf %16 : vector<16x32xbf16> to vector<16x32xf32>
      %18 = arith.addf %15, %17 : vector<16x32xf32>
      %cst_16 = arith.constant dense<0.000000e+00> : vector<16xf32>
      %19 = vector.multi_reduction <add>, %18, %cst_16 [1] : vector<16x32xf32> to vector<16xf32>
      %20 = vector.shape_cast %19 : vector<16xf32> to vector<16x1xf32>
      %cst_17 = arith.constant 3.200000e+01 : f32
      %21 = vector.broadcast %cst_17 : f32 to vector<16x1xf32>
      %22 = arith.divf %20, %21 : vector<16x1xf32>
      %23 = vector.broadcast %22 : vector<16x1xf32> to vector<16x32xf32>
      %24 = arith.subf %18, %23 : vector<16x32xf32>
      %25 = vector.broadcast %22 : vector<16x1xf32> to vector<16x32xf32>
      %26 = arith.subf %18, %25 : vector<16x32xf32>
      %27 = arith.mulf %24, %26 : vector<16x32xf32>
      %cst_18 = arith.constant dense<0.000000e+00> : vector<16xf32>
      %28 = vector.multi_reduction <add>, %27, %cst_18 [1] : vector<16x32xf32> to vector<16xf32>
      %29 = vector.shape_cast %28 : vector<16xf32> to vector<16x1xf32>
      %cst_19 = arith.constant 3.200000e+01 : f32
      %30 = vector.broadcast %cst_19 : f32 to vector<16x1xf32>
      %31 = arith.divf %29, %30 : vector<16x1xf32>
      %32 = vector.broadcast %22 : vector<16x1xf32> to vector<16x32xf32>
      %33 = arith.subf %18, %32 : vector<16x32xf32>
      %cst_20 = arith.constant 9.99999974E-6 : f32
      %34 = vector.broadcast %cst_20 : f32 to vector<16x1xf32>
      %35 = arith.addf %31, %34 : vector<16x1xf32>
      %36 = math.rsqrt %35 : vector<16x1xf32>
      %37 = vector.broadcast %36 : vector<16x1xf32> to vector<16x32xf32>
      %38 = arith.mulf %33, %37 : vector<16x32xf32>
      %c0_21 = arith.constant 0 : index
      %c0_22 = arith.constant 0 : index
      %39 = vector.load %arg6[%c0_21, %c0_22] : memref<1x32xf32, #tpu.memory_space<vmem>>, vector<1x32xf32>
      %40 = vector.broadcast %39 : vector<1x32xf32> to vector<16x32xf32>
      %41 = arith.mulf %38, %40 : vector<16x32xf32>
      %c0_23 = arith.constant 0 : index
      %c0_24 = arith.constant 0 : index
      %42 = vector.load %arg7[%c0_23, %c0_24] : memref<1x32xf32, #tpu.memory_space<vmem>>, vector<1x32xf32>
      %43 = vector.broadcast %42 : vector<1x32xf32> to vector<16x32xf32>
      %44 = arith.addf %41, %43 : vector<16x32xf32>
      %45 = arith.truncf %44 : vector<16x32xf32> to vector<16x32xbf16>
      %c0_25 = arith.constant 0 : index
      %c0_26 = arith.constant 0 : index
      %46 = vector.load %arg8[%c0_25, %c0_26] : memref<16x32xbf16, #tpu.memory_space<vmem>>, vector<16x32xbf16>
      tpu.vector_store %arg8[%c0_25, %c0_26], %45 {strides = array<i32>} : memref<16x32xbf16, #tpu.memory_space<vmem>>, vector<16x32xbf16>,
    } else {
    }
    return
  }
  func.func @transform_0(%arg0: i32, %arg1: i32) -> (i32, i32) {
    %c0_i32 = arith.constant 0 : i32
    return %arg0, %arg1 : i32, i32
  }
  func.func @transform_1(%arg0: i32, %arg1: i32) -> (i32, i32) {
    %c0_i32 = arith.constant 0 : i32
    %c0_i32_0 = arith.constant 0 : i32
    return %arg1, %c0_i32 : i32, i32
  }
  func.func @transform_2(%arg0: i32, %arg1: i32) -> (i32, i32) {
    %c0_i32 = arith.constant 0 : i32
    %c0_i32_0 = arith.constant 0 : i32
    %c0_i32_1 = arith.constant 0 : i32
    return %c0_i32, %c0_i32_0 : i32, i32
  }
  func.func @transform_3(%arg0: i32, %arg1: i32) -> (i32, i32) {
    %c0_i32 = arith.constant 0 : i32
    %c0_i32_0 = arith.constant 0 : i32
    return %arg0, %c0_i32 : i32, i32
  }
  func.func @transform_4(%arg0: i32, %arg1: i32) -> (i32, i32) {
    %c0_i32 = arith.constant 0 : i32
    %c0_i32_0 = arith.constant 0 : i32
    %c0_i32_1 = arith.constant 0 : i32
    return %c0_i32, %c0_i32_0 : i32, i32
  }
  func.func @transform_5(%arg0: i32, %arg1: i32) -> (i32, i32) {
    %c0_i32 = arith.constant 0 : i32
    %c0_i32_0 = arith.constant 0 : i32
    %c0_i32_1 = arith.constant 0 : i32
    return %c0_i32, %c0_i32_0 : i32, i32
  }
  func.func @transform_6(%arg0: i32, %arg1: i32) -> (i32, i32) {
    %c0_i32 = arith.constant 0 : i32
    %c0_i32_0 = arith.constant 0 : i32
    return %arg0, %c0_i32 : i32, i32
  }
}

</mosaic_0001>

<bundles_post_ra>
// kernel: seq2seq_forward.11
= control target key start
LH: loop header
LB: loop body
LE: loop exit
PB: predicated region body
PF: predicated region fallthrough
CT: control target
= control target key end

     0   :  { %s470_s15 = smov 0   ;;  %s472_s16 = smov 0   ;;  %s521_s0 = inlined_call_operand.vmem [shape: bf16[2,8,32], index: 0, kind: input, shape index: {}]   ;;  %s522_s1 = inlined_call_operand.vmem [shape: bf16[8,32], index: 1, kind: input, shape index: {}]   ;;  %s523_s2 = inlined_call_operand.vmem [shape: f32[1,32], index: 2, kind: input, shape index: {}]   ;;  %s524_s3 = inlined_call_operand.vmem [shape: f32[1,32], index: 3, kind: input, shape index: {}]   ;;  %s525_s4 = inlined_call_operand.vmem [shape: bf16[2,8,32], index: 4, kind: output, shape index: {}]  }
   0x1   :  { %s474_s17 = smov 0  }
   0x2 LB: > { %s26_s18 = sadd.s32 1, %s438_s16  ;;  %p384_p0 = scmp.ge.s32.totalorder %s442_s17, 1  ;;  %s442_s17 = sphi %s474_s17, %s14_s17   ;;  %s438_s16 = sphi %s472_s16, %s527_s16   ;;  %s434_s15 = sphi %s470_s15, %s526_s15  }
   0x3   : > { %p28_p1 = scmp.ge.s32.totalorder %s26_s18, 2  ;;  %p189_p2 = scmp.lt.s32.totalorder %s442_s17, 3 }
   0x5   : > { %s529_s18 = smov (%p28_p1, %s26_s18), 0  ;;  %p190_p3 = pnand %p384_p0, %p189_p2 }
   0x6   : > { %p223_p4 = scmp.lt.s32.totalorder (!%p190_p3), %s434_s15, 1 }
   0x7   : > { %193 = sbr.rel (%p190_p3) target bundleno = 291 (0x123), region = 36 }
   0xc   : > { %s531_s15 = smov (!%p223_p4, %s434_s15), 1  ;;  %v243_v0 = vld [vmem:[%s522_s1] sm:$0xf]  ;;  %vm246_vm0 = vcmask 261120   ;;  %v444_v6 = vmov 32.0   ;;  %vm287_vm5 = vcmask 257024  }
   0xd   : > { %s385_s21 = sshll.u32 %s531_s15, 2  ;;  %v244_v1 = vunpack.c.l.bf16 %v243_v0  ;;  %416 = vrcp.f32 %v444_v6  ;;  %v414_v27 = vld [vmem:[%s523_s2] ss:$0 sm:$0xff] }
   0xe   : > { %s229_s24 = scalar_lea.vmem %s521_s0, %s385_s21  ;;  %v415_v29 = vld [vmem:[%s524_s3] ss:$0 sm:$0xff]  ;;  %s240_s5 = scalar_lea.vmem %s525_s4, %s385_s21 }
   0xf   : > { %v241_v2 = vld [vmem:[%s229_s24] sm:$0xf] }
  0x10   : > { %v242_v3 = vunpack.c.l.bf16 %v241_v2 }
  0x12   : > { %v245_v4 = vadd.f32 %v244_v1, %v242_v3 }
  0x13   : > { %v417_v7 = vpop.eup %416 }
  0x14   : > { %v247_v5 = vsel %vm246_vm0, %v245_v4, 0.0  ;;  %v251_v8 = vmul.f32 32.0, %v417_v7  ;;  %vm255_vm1 = vweird.f32 %v417_v7 }
  0x15   : > { %248 = vadd.xlane.f32.xlu0 %v247_v5 }
  0x16   : > { %v252_v9 = vsub.f32 1.0, %v251_v8 }
  0x18   : > { %v253_v10 = vmul.f32 %v417_v7, %v252_v9 }
  0x1a   : > { %v254_v11 = vadd.f32 %v417_v7, %v253_v10 }
  0x1c   : > { %v256_v12 = vsel %vm255_vm1, %v417_v7, %v254_v11 }
  0x88   : > { %v249_v13 = vpop.xlane.xlu0 %248 }
  0x89   : > { %v257_v14 = vmul.f32 %v256_v12, %v249_v13 }
  0x8b   : > { %v258_v15 = vsub.f32 %v245_v4, %v257_v14 }
  0x8d   : > { %v259_v16 = vmul.f32 %v258_v15, %v258_v15 }
  0x8f   : > { %v260_v17 = vsel %vm246_vm0, %v259_v16, 0.0 }
  0x90   : > { %261 = vadd.xlane.f32.xlu0 %v260_v17 }
 0x103   : > { %v262_v18 = vpop.xlane.xlu0 %261 }
 0x104   : > { %v263_v19 = vmul.f32 %v262_v18, %v256_v12 }
 0x106   : > { %v264_v20 = vadd.f32 1e-05, %v263_v19 }
 0x108   : > { %418 = vrsqrt.f32 %v264_v20  ;;  %vm271_vm3 = vweird.f32 %v264_v20 }
 0x10e   : > { %v419_v21 = vpop.eup %418 }
 0x10f   : > { %v266_v22 = vmul.f32 %v419_v21, %v264_v20  ;;  %vm272_vm2 = vweird.f32 %v419_v21 }
 0x110   : > { %vm273_vm4 = vmor %vm271_vm3, %vm272_vm2 }
 0x111   : > { %v267_v23 = vmul.f32 %v419_v21, %v266_v22 }
 0x113   : > { %v268_v24 = vmul.f32 0.5, %v267_v23 }
 0x115   : > { %v269_v25 = vsub.f32 1.5, %v268_v24 }
 0x117   : > { %v270_v26 = vmul.f32 %v419_v21, %v269_v25 }
 0x119   : > { %v274_v28 = vsel %vm273_vm4, %v419_v21, %v270_v26 }
 0x11a   : > { %v275_v30 = vmul.f32 %v274_v28, %v258_v15 }
 0x11c   : > { %v280_v31 = vmul.f32 %v414_v27, %v275_v30 }
 0x11e   : > { %v285_v32 = vadd.f32 %v415_v29, %v280_v31 }
 0x120   : > { %v286_v33 = vpack.c.bf16 %v285_v32, %v285_v32 }
 0x122   : > { %288 = vst.msk [vmem:[%s240_s5] sm:$0xf] %vm287_vm5, %v286_v33 }
 0x123 PF: > { %s14_s17 = sadd.s32 1, %s442_s17   ;;  %s526_s15 = smov %s438_s16 }
 0x124   : > { %p11_p5 = scmp.ge.s32.totalorder %s14_s17, 4   ;;  %s527_s16 = smov %s529_s18 }
 0x126   :  { %13 = sbr.rel (!%p11_p5) target bundleno = 2 (0x2), region = 69 }

// kernel: seq2seq_forward.12
= control target key start
LH: loop header
LB: loop body
LE: loop exit
PB: predicated region body
PF: predicated region fallthrough
CT: control target
= control target key end

     0   :  { %vm19_vm0 = vcmask 785408   ;;  %v108_v1 = vmov 0.0   ;;  %vm47_vm1 = vcmask 261120   ;;  %vm83_vm2 = vcmask 781312   ;;  %s151_s1 = inlined_call_operand.vmem [shape: bf16[32,96], index: 1, kind: input, shape index: {}]   ;;  %s152_s2 = inlined_call_operand.vmem [shape: f32[1,96], index: 2, kind: input, shape index: {}]   ;;  %s153_s0 = inlined_call_operand.vmem [shape: bf16[16,32], index: 0, kind: input, shape index: {}]   ;;  %s154_s3 = inlined_call_operand.vmem [shape: bf16[16,96], index: 3, kind: output, shape index: {}]  }
   0x1   :  { %v105_v0 = vld [vmem:[%s151_s1 + $0x8] sm:$0xff]  ;;  %20 = vst.msk [vmem:[#allocation2] sm:$0xff] %vm19_vm0, %v108_v1  ;;  %v104_v2 = vld [vmem:[%s151_s1] sm:$0xff] }
   0x2   :  { %21 = vst.msk [vmem:[#allocation2 + $0x8] sm:$0xff] %vm19_vm0, %v108_v1  ;;  %57 = vmatpush.bf16.msra.mxu0 %v105_v0  ;;  %v103_v3 = vld [vmem:[%s153_s0] sm:$0xff] }
   0x3   :  { %v107_v8 = vld [vmem:[%s152_s2] ss:$0 sm:$0xff] }
   0x6   :  { %58 = vmatpush.bf16.msra.mxu0 %v104_v2 }
   0x8   :  { %v22_v4 = vld [vmem:[#allocation2] sm:$0xff] }
   0x9   :  { %102 = vmatmul.msk.bf16.vlgmr.msra.gmra.mxu0 %vm47_vm1, %v103_v3  ;;  %v23_v7 = vld [vmem:[#allocation2 + $0x8] sm:$0xff] }
  0x86   :  { %v60_v5 = vpop.f32.mrf.mxu0 }
  0x87   :  { %v65_v6 = vadd.f32 %v60_v5, %v22_v4 }
  0x89   :  { %68 = vst.msk [vmem:[#allocation2] sm:$0xff] %vm19_vm0, %v65_v6 }
  0x8e   :  { %v62_v9 = vpop.f32.mrf.mxu0 }
  0x8f   :  { %v66_v10 = vadd.f32 %v62_v9, %v23_v7 }
  0x90   :  { %v73_v11 = vld [vmem:[#allocation2] sm:$0xff] }
  0x91   :  { %v79_v12 = vadd.f32 %v107_v8, %v73_v11  ;;  %69 = vst.msk [vmem:[#allocation2 + $0x8] sm:$0xff] %vm19_vm0, %v66_v10 }
  0x93   :  { %v81_v13 = vpack.c.bf16 %v79_v12, %v79_v12 }
  0x95   :  { %84 = vst.msk [vmem:[%s154_s3] sm:$0xf] %vm83_vm2, %v81_v13 }
  0x98   :  { %v74_v14 = vld [vmem:[#allocation2 + $0x8] sm:$0xff] }
  0x99   :  { %v80_v15 = vadd.f32 %v107_v8, %v74_v14 }
  0x9b   :  { %v82_v16 = vpack.c.bf16 %v80_v15, %v80_v15 }
  0x9d   :  { %85 = vst.msk [vmem:[%s154_s3 + $0x4] sm:$0xf] %vm83_vm2, %v82_v16 }

// kernel: seq2seq_forward.14
= control target key start
LH: loop header
LB: loop body
LE: loop exit
PB: predicated region body
PF: predicated region fallthrough
CT: control target
= control target key end

     0   :  { %vm28_vm0 = vcmask 261120   ;;  %v198_v1 = vmov 0.0   ;;  %v199_v22 = vmov 32.0   ;;  %vm160_vm6 = vcmask 257024   ;;  %s271_s1 = inlined_call_operand.vmem [shape: bf16[32,32], index: 1, kind: input, shape index: {}]   ;;  %s272_s0 = inlined_call_operand.vmem [shape: bf16[16,32], index: 0, kind: input, shape index: {}]   ;;  %s273_s2 = inlined_call_operand.vmem [shape: f32[1,32], index: 2, kind: input, shape index: {}]   ;;  %s274_s3 = inlined_call_operand.vmem [shape: bf16[16,32], index: 3, kind: input, shape index: {}]   ;;  %s275_s4 = inlined_call_operand.vmem [shape: f32[1,32], index: 4, kind: input, shape index: {}]   ;;  %s276_s5 = inlined_call_operand.vmem [shape: f32[1,32], index: 5, kind: input, shape index: {}]   ;;  %s277_s6 = inlined_call_operand.vmem [shape: bf16[16,32], index: 6, kind: output, shape index: {}]  }
   0x1   :  { %v182_v0 = vld [vmem:[%s271_s1 + $0x8] sm:$0xff]  ;;  %29 = vst.msk [vmem:[#allocation2] sm:$0xff] %vm28_vm0, %v198_v1  ;;  %v181_v2 = vld [vmem:[%s271_s1] sm:$0xff]  ;;  %192 = vrcp.f32 %v199_v22 }
   0x2   :  { %30 = vst.msk [vmem:[#allocation2 + $0x8] sm:$0xff] %vm28_vm0, %v198_v1  ;;  %66 = vmatpush.bf16.msra.mxu0 %v182_v0  ;;  %v180_v3 = vld [vmem:[%s272_s0] sm:$0xff] }
   0x3   :  { %v184_v8 = vld [vmem:[%s274_s3] sm:$0xff]  }
   0x4   :  { %v189_v9 = vld [vmem:[%s273_s2] ss:$0 sm:$0xff]  ;;  %v185_v12 = vunpack.c.l.bf16 %v184_v8  ;;  %v186_v17 = vunpack.c.h.bf16 %v184_v8 }
   0x5   :  { %v190_v53 = vld [vmem:[%s275_s4] ss:$0 sm:$0xff] }
   0x6   :  { %67 = vmatpush.bf16.msra.mxu0 %v181_v2  ;;  %v191_v56 = vld [vmem:[%s276_s5] ss:$0 sm:$0xff] }
   0x7   :  { %v193_v23 = vpop.eup %192 }
   0x8   :  { %v31_v4 = vld [vmem:[#allocation2] sm:$0xff]  ;;  %v102_v24 = vmul.f32 32.0, %v193_v23  ;;  %vm106_vm1 = vweird.f32 %v193_v23 }
   0x9   :  { %179 = vmatmul.msk.bf16.vlgmr.msra.gmra.mxu0 %vm28_vm0, %v180_v3  ;;  %v32_v7 = vld [vmem:[#allocation2 + $0x8] sm:$0xff] }
   0xa   :  { %v103_v25 = vsub.f32 1.0, %v102_v24 }
   0xc   :  { %v104_v26 = vmul.f32 %v193_v23, %v103_v25 }
   0xe   :  { %v105_v27 = vadd.f32 %v193_v23, %v104_v26 }
  0x10   :  { %v107_v28 = vsel %vm106_vm1, %v193_v23, %v105_v27 }
  0x86   :  { %v69_v5 = vpop.f32.mrf.mxu0 }
  0x87   :  { %v74_v6 = vadd.f32 %v69_v5, %v31_v4 }
  0x89   :  { %76 = vst.msk [vmem:[#allocation2] sm:$0xff] %vm28_vm0, %v74_v6 }
  0x8e   :  { %v71_v10 = vpop.f32.mrf.mxu0 }
  0x8f   :  { %v75_v11 = vadd.f32 %v71_v10, %v32_v7 }
  0x90   :  { %v81_v13 = vld [vmem:[#allocation2] sm:$0xff] }
  0x91   :  { %77 = vst.msk [vmem:[#allocation2 + $0x8] sm:$0xff] %vm28_vm0, %v75_v11  ;;  %v87_v14 = vadd.f32 %v189_v9, %v81_v13 }
  0x93   :  { %v93_v15 = vadd.f32 %v185_v12, %v87_v14 }
  0x95   :  { %v95_v16 = vsel %vm28_vm0, %v93_v15, 0.0 }
  0x96   :  { %96 = vadd.xlane.f32.xlu0 %v95_v16 }
  0x98   :  { %v82_v18 = vld [vmem:[#allocation2 + $0x8] sm:$0xff] }
  0x99   :  { %v88_v19 = vadd.f32 %v189_v9, %v82_v18 }
  0x9b   :  { %v94_v20 = vadd.f32 %v186_v17, %v88_v19 }
  0x9d   :  { %v98_v21 = vsel %vm28_vm0, %v94_v20, 0.0 }
  0x9e   :  { %99 = vadd.xlane.f32.xlu0 %v98_v21 }
 0x109   :  { %v97_v29 = vpop.xlane.xlu0 %96 }
 0x10a   :  { %v108_v30 = vmul.f32 %v107_v28, %v97_v29 }
 0x10c   :  { %v110_v31 = vsub.f32 %v93_v15, %v108_v30 }
 0x10e   :  { %v112_v32 = vmul.f32 %v110_v31, %v110_v31 }
 0x110   :  { %v114_v33 = vsel %vm28_vm0, %v112_v32, 0.0 }
 0x111   :  { %115 = vadd.xlane.f32.xlu1 %v114_v33  ;;  %v100_v34 = vpop.xlane.xlu0 %99 }
 0x112   :  { %v109_v35 = vmul.f32 %v107_v28, %v100_v34 }
 0x114   :  { %v111_v36 = vsub.f32 %v94_v20, %v109_v35 }
 0x116   :  { %v113_v37 = vmul.f32 %v111_v36, %v111_v36 }
 0x118   :  { %v117_v38 = vsel %vm28_vm0, %v113_v37, 0.0 }
 0x119   :  { %118 = vadd.xlane.f32.xlu1 %v117_v38 }
 0x184   :  { %v116_v39 = vpop.xlane.xlu1 %115 }
 0x185   :  { %v120_v40 = vmul.f32 %v116_v39, %v107_v28 }
 0x187   :  { %v122_v41 = vadd.f32 1e-05, %v120_v40 }
 0x189   :  { %194 = vrsqrt.f32 %v122_v41  ;;  %vm130_vm3 = vweird.f32 %v122_v41 }
 0x18c   :  { %v119_v42 = vpop.xlane.xlu1 %118 }
 0x18d   :  { %v121_v43 = vmul.f32 %v119_v42, %v107_v28 }
 0x18f   :  { %v195_v44 = vpop.eup %194  ;;  %v123_v45 = vadd.f32 1e-05, %v121_v43 }
 0x190   :  { %v125_v46 = vmul.f32 %v195_v44, %v122_v41  ;;  %vm131_vm2 = vweird.f32 %v195_v44 }
 0x191   :  { %196 = vrsqrt.f32 %v123_v45  ;;  %vm132_vm4 = vmor %vm130_vm3, %vm131_vm2  ;;  %vm140_vm7 = vweird.f32 %v123_v45 }
 0x192   :  { %v126_v47 = vmul.f32 %v195_v44, %v125_v46 }
 0x194   :  { %v127_v48 = vmul.f32 0.5, %v126_v47 }
 0x196   :  { %v128_v49 = vsub.f32 1.5, %v127_v48 }
 0x197   :  { %v197_v50 = vpop.eup %196 }
 0x198   :  { %v129_v51 = vmul.f32 %v195_v44, %v128_v49  ;;  %v135_v52 = vmul.f32 %v197_v50, %v123_v45  ;;  %vm141_vm5 = vweird.f32 %v197_v50 }
 0x199   :  { %vm142_vm8 = vmor %vm140_vm7, %vm141_vm5 }
 0x19a   :  { %v133_v54 = vsel %vm132_vm4, %v195_v44, %v129_v51  ;;  %v136_v55 = vmul.f32 %v197_v50, %v135_v52 }
 0x19b   :  { %v144_v57 = vmul.f32 %v133_v54, %v110_v31 }
 0x19c   :  { %v137_v58 = vmul.f32 0.5, %v136_v55 }
 0x19d   :  { %v150_v59 = vmul.f32 %v190_v53, %v144_v57 }
 0x19e   :  { %v138_v60 = vsub.f32 1.5, %v137_v58 }
 0x19f   :  { %v156_v61 = vadd.f32 %v191_v56, %v150_v59 }
 0x1a0   :  { %v139_v62 = vmul.f32 %v197_v50, %v138_v60 }
 0x1a1   :  { %v158_v63 = vpack.c.bf16 %v156_v61, %v156_v61 }
 0x1a2   :  { %v143_v0 = vsel %vm142_vm8, %v197_v50, %v139_v62 }
 0x1a3   :  { %161 = vst.msk [vmem:[%s277_s6] sm:$0xf] %vm160_vm6, %v158_v63  ;;  %v145_v1 = vmul.f32 %v143_v0, %v111_v36 }
 0x1a5   :  { %v151_v2 = vmul.f32 %v190_v53, %v145_v1 }
 0x1a7   :  { %v157_v3 = vadd.f32 %v191_v56, %v151_v2 }
 0x1a9   :  { %v159_v4 = vpack.c.bf16 %v157_v3, %v157_v3 }
 0x1ab   :  { %162 = vst.msk [vmem:[%s277_s6 + $0x4] sm:$0xf] %vm160_vm6, %v159_v4 }

// kernel: seq2seq_forward.13
= control target key start
LH: loop header
LB: loop body
LE: loop exit
PB: predicated region body
PF: predicated region fallthrough
CT: control target
= control target key end

     0   :  { %s770_s12 = smov 0   ;;  %s772_s13 = smov 0   ;;  %s852_s0 = inlined_call_operand.vmem [shape: bf16[2,8,32], index: 0, kind: input, shape index: {}]   ;;  %s853_s1 = inlined_call_operand.vmem [shape: bf16[2,8,32], index: 1, kind: input, shape index: {}]   ;;  %s854_s2 = inlined_call_operand.vmem [shape: bf16[2,8,32], index: 2, kind: input, shape index: {}]   ;;  %s855_s3 = inlined_call_operand.vmem [shape: bf16[2,8,32], index: 3, kind: output, shape index: {}]  }
   0x1   :  { %s774_s14 = smov 0  }
   0x2 LB: > { %s32_s15 = sadd.s32 1, %s738_s13  ;;  %p659_p0 = scmp.ge.s32.totalorder %s742_s14, 1  ;;  %s742_s14 = sphi %s774_s14, %s13_s14   ;;  %s738_s13 = sphi %s772_s13, %s857_s13   ;;  %s734_s12 = sphi %s770_s12, %s856_s12  }
   0x3   : > { %p34_p1 = scmp.ge.s32.totalorder %s32_s15, 2  ;;  %p197_p2 = scmp.lt.s32.totalorder %s742_s14, 3 }
   0x5   : > { %s859_s15 = smov (%p34_p1, %s32_s15), 0  ;;  %p198_p3 = pnand %p659_p0, %p197_p2 }
   0x6   : > { %p245_p4 = scmp.lt.s32.totalorder (!%p198_p3), %s734_s12, 1  ;;  %s744_s23 = smov (!%p198_p3), 112  }
   0x7   : > { %201 = sbr.rel (%p198_p3) target bundleno = 1078 (0x436), region = 32  ;;  %s745_s24 = smov (!%p198_p3), 104  }
   0x8   : > { %s746_s25 = smov (!%p198_p3), 120   ;;  %s747_s29 = smov (!%p198_p3), 8  }
   0x9   : > { %s748_s30 = smov (!%p198_p3), 16   ;;  %s749_s4 = smov (!%p198_p3), 24  }
   0xc   : > { %s861_s12 = smov (!%p245_p4, %s734_s12), 1  ;;  %vm286_vm0 = vcmask 64512   ;;  %vm321_vm1 = vcmask 1043456   ;;  %vm528_vm2 = vcmask 130048   ;;  %vm530_vm3 = vcmask 195584  }
   0xd   : > { %s788_s16 = sshll.u32 %s861_s12, 2  ;;  %vm533_vm4 = vcmask 257024  }
   0xe   : > { %s261_s19 = scalar_lea.vmem %s853_s1, %s788_s16  ;;  %s254_s22 = scalar_lea.vmem %s852_s0, %s788_s16 }
   0xf   : > { %v284_v0 = vld [vmem:[%s261_s19] sm:$0xf]  ;;  %s268_s28 = scalar_lea.vmem %s854_s2, %s788_s16  ;;  %s278_s7 = scalar_lea.vmem %s855_s3, %s788_s16 }
  0x10   : > { %v280_v1 = vld [vmem:[%s254_s22] sm:$0xf]  ;;  %v291_v2 = vsel %vm286_vm0, %v284_v0, 0  ;;  %v344_v6 = vunpack.c.l.b16 %v284_v0 }
  0x11   : > { %v281_v3 = vunpack.c.l.bf16 %v280_v1  ;;  %300 = vmatpush.bf16.xpose.msra.mxu0 %v291_v2  ;;  %v285_v23 = vld [vmem:[%s268_s28] sm:$0xf] }
  0x12   : > { %v345_v7 = vpack.c.b16 %v344_v6, %v344_v6  ;;  %v323_v24 = vsel %vm321_vm1, %v285_v23, 0  ;;  %v380_v44 = vunpack.c.l.b16 %v285_v23 }
  0x13   : > { %v282_v4 = vmul.f32 0.35355338, %v281_v3  ;;  %332 = vmatpush.bf16.msra.mxu1 %v323_v24 }
  0x14   : > { %405 = vrot.lane.b32.xlu2 %v345_v7, %s744_s23  ;;  %v381_v45 = vpack.c.b16 %v380_v44, %v380_v44 }
  0x15   : > { %v283_v5 = vpack.c.bf16 %v282_v4, %v282_v4 }
  0x17   : > { %v339_v8 = vunpack.c.l.b16 %v283_v5 }
  0x18   : > { %664 = vmatmul.msk.bf16.vlgmr.msra.gmra.mxu0 %vm286_vm0, %v283_v5 }
  0x19   : > { %v340_v9 = vpack.c.b16 %v339_v8, %v339_v8 }
  0x1c   : > { %461 = vrot.lane.b32.xlu2 %v345_v7, %s745_s24 }
  0x24   : > { %403 = vrot.lane.b32.xlu2 %v340_v9, %s744_s23 }
  0x2c   : > { %459 = vrot.lane.b32.xlu2 %v340_v9, %s745_s24 }
  0x6e   : > { %v406_v13 = vpop.permute.xlu2 %405 }
  0x6f   : > { %v411_v25 = vsel %vm286_vm0, %v406_v13, 0 }
  0x70   : > { %420 = vmatpush.bf16.xpose.msrb.mxu1 %v411_v25 }
  0x76   : > { %v462_v14 = vpop.permute.xlu2 %461 }
  0x77   : > { %v467_v19 = vsel %vm286_vm0, %v462_v14, 0 }
  0x78   : > { %476 = vmatpush.bf16.xpose.msrb.mxu0 %v467_v19 }
  0x7e   : > { %v404_v18 = vpop.permute.xlu2 %403 }
  0x86   : > { %v460_v22 = vpop.permute.xlu2 %459 }
  0x87   : > { %670 = vmatmul.msk.bf16.vlgmr.msrb.gmra.mxu0 %vm286_vm0, %v460_v22 }
  0x95   : > { %v302_v10 = vpop.f32.mrf.mxu0 }
  0x96   : > { %v306_v11 = vsel %vm286_vm0, %v302_v10, -inf }
  0x97   : > { %307 = vmax.xlane.f32.xlu0 %v306_v11 }
  0x9d   : > { %v304_v12 = vpop.f32.mrf.mxu0 }
  0xab   : > { %346 = vrot.lane.b32.xlu0 %v345_v7, %s746_s25 }
 0x104   : > { %v478_v32 = vpop.f32.mrf.mxu0 }
 0x105   : > { %v482_v33 = vsel %vm286_vm0, %v478_v32, -inf }
 0x10a   : > { %v308_v15 = vpop.xlane.xlu0 %307 }
 0x10b   : > { %v309_v16 = vsub.f32 %v302_v10, %v308_v15 }
 0x10c   : > { %v480_v34 = vpop.f32.mrf.mxu0 }
 0x10d   : > { %v310_v17 = vmul.f32 1.442695, %v309_v16 }
 0x10f   : > { %704 = vpow2.f32 %v310_v17 }
 0x115   : > { %v705_v20 = vpop.eup %704 }
 0x116   : > { %v312_v21 = vsel %vm286_vm0, %v705_v20, 0.0 }
 0x117   : > { %313 = vadd.xlane.f32.xlu1 %v312_v21 }
 0x11d   : > { %v347_v26 = vpop.permute.xlu0 %346 }
 0x11e   : > { %v352_v27 = vsel %vm286_vm0, %v347_v26, 0 }
 0x11f   : > { %361 = vmatpush.bf16.xpose.msra.mxu2 %v352_v27 }
 0x130   : > { %341 = vrot.lane.b32.xlu1 %v340_v9, %s746_s25 }
 0x15a   : > { %483 = vmax.xlane.f32.xlu1 %v482_v33 }
 0x18a   : > { %v314_v28 = vpop.xlane.xlu1 %313 }
 0x18b   : > { %706 = vrcp.f32 %v314_v28 }
 0x191   : > { %v707_v29 = vpop.eup %706 }
 0x192   : > { %v316_v30 = vmul.f32 %v707_v29, %v705_v20 }
 0x194   : > { %v317_v31 = vpack.c.bf16 %v316_v30, %v316_v30 }
 0x196   : > { %665 = vmatmul.msk.bf16.vlgmr.msra.gmra.mxu1 %vm286_vm0, %v317_v31 }
 0x1a2   : > { %v342_v35 = vpop.permute.xlu1 %341 }
 0x1a3   : > { %666 = vmatmul.msk.bf16.vlgmr.msra.gmra.mxu2 %vm286_vm0, %v342_v35 }
 0x1a6   : > { %668 = vmatmul.msk.bf16.vlgmr.msrb.gmra.mxu1 %vm286_vm0, %v404_v18 }
 0x1cd   : > { %v484_v48 = vpop.xlane.xlu1 %483 }
 0x1ce   : > { %v485_v52 = vsub.f32 %v478_v32, %v484_v48 }
 0x1d0   : > { %v486_v54 = vmul.f32 1.442695, %v485_v52 }
 0x213   : > { %v821_v36 = vpop.f32.mrf.mxu1 }
 0x21b   : > { %v336_v37 = vpop.f32.mrf.mxu1 }
 0x223   : > { %v422_v38 = vpop.f32.mrf.mxu1 }
 0x224   : > { %v426_v39 = vsel %vm286_vm0, %v422_v38, -inf }
 0x225   : > { %427 = vmax.xlane.f32.xlu2 %v426_v39 }
 0x226   : > { %v363_v40 = vpop.f32.mrf.mxu2 }
 0x227   : > { %v367_v41 = vsel %vm286_vm0, %v363_v40, -inf }
 0x228   : > { %368 = vmax.xlane.f32.xlu0 %v367_v41 }
 0x22b   : > { %v424_v42 = vpop.f32.mrf.mxu1 }
 0x22e   : > { %v365_v43 = vpop.f32.mrf.mxu2 }
 0x23d   : > { %382 = vrot.lane.b32.xlu2 %v381_v45, %s746_s25 }
 0x298   : > { %v428_v46 = vpop.xlane.xlu2 %427 }
 0x299   : > { %v429_v47 = vsub.f32 %v422_v38, %v428_v46 }
 0x29b   : > { %v430_v49 = vmul.f32 1.442695, %v429_v47  ;;  %v369_v50 = vpop.xlane.xlu0 %368 }
 0x29c   : > { %v370_v51 = vsub.f32 %v363_v40, %v369_v50 }
 0x29d   : > { %708 = vpow2.f32 %v430_v49 }
 0x29e   : > { %v371_v53 = vmul.f32 1.442695, %v370_v51 }
 0x2a0   : > { %710 = vpow2.f32 %v371_v53  ;;  %v383_v61 = vpop.permute.xlu2 %382 }
 0x2a1   : > { %712 = vpow2.f32 %v486_v54  ;;  %v388_v62 = vsel %vm321_vm1, %v383_v61, 0 }
 0x2a2   : > { %397 = vmatpush.bf16.msra.mxu3 %v388_v62 }
 0x2a3   : > { %v709_v55 = vpop.eup %708 }
 0x2a4   : > { %v432_v56 = vsel %vm286_vm0, %v709_v55, 0.0 }
 0x2a5   : > { %433 = vadd.xlane.f32.xlu1 %v432_v56 }
 0x2a6   : > { %v711_v57 = vpop.eup %710 }
 0x2a7   : > { %v373_v58 = vsel %vm286_vm0, %v711_v57, 0.0  ;;  %v713_v59 = vpop.eup %712 }
 0x2a8   : > { %374 = vadd.xlane.f32.xlu0 %v373_v58  ;;  %v488_v60 = vsel %vm286_vm0, %v713_v59, 0.0 }
 0x2b0   : > { %489 = vadd.xlane.f32.xlu0 %v488_v60 }
 0x2be   : > { %438 = vrot.lane.b32.xlu1 %v381_v45, %s744_s23 }
 0x2c4   : > { %494 = vrot.lane.b32.xlu0 %v381_v45, %s745_s24 }
 0x318   : > { %v434_v2 = vpop.xlane.xlu1 %433 }
 0x31b   : > { %v375_v63 = vpop.xlane.xlu0 %374 }
 0x31c   : > { %714 = vrcp.f32 %v375_v63 }
 0x31d   : > { %716 = vrcp.f32 %v434_v2 }
 0x322   : > { %v715_v0 = vpop.eup %714 }
 0x323   : > { %v377_v1 = vmul.f32 %v715_v0, %v711_v57  ;;  %v490_v4 = vpop.xlane.xlu0 %489  ;;  %v717_v5 = vpop.eup %716 }
 0x324   : > { %718 = vrcp.f32 %v490_v4  ;;  %v436_v7 = vmul.f32 %v717_v5, %v709_v55 }
 0x325   : > { %v378_v3 = vpack.c.bf16 %v377_v1, %v377_v1 }
 0x326   : > { %v437_v11 = vpack.c.bf16 %v436_v7, %v436_v7 }
 0x327   : > { %667 = vmatmul.msk.bf16.vlgmr.msra.gmra.mxu3 %vm286_vm0, %v378_v3 }
 0x32a   : > { %v719_v9 = vpop.eup %718 }
 0x32b   : > { %v492_v10 = vmul.f32 %v719_v9, %v713_v59 }
 0x32d   : > { %v493_v14 = vpack.c.bf16 %v492_v10, %v492_v10 }
 0x330   : > { %v439_v6 = vpop.permute.xlu1 %438 }
 0x331   : > { %v444_v8 = vsel %vm321_vm1, %v439_v6, 0 }
 0x332   : > { %453 = vmatpush.bf16.msrb.mxu3 %v444_v8 }
 0x336   : > { %v495_v12 = vpop.permute.xlu0 %494 }
 0x337   : > { %669 = vmatmul.msk.bf16.vlgmr.msrb.gmra.mxu3 %vm286_vm0, %v437_v11  ;;  %v500_v13 = vsel %vm321_vm1, %v495_v12, 0 }
 0x338   : > { %509 = vmatpush.bf16.msrb.mxu2 %v500_v13 }
 0x33b   : > { %671 = vmatmul.msk.bf16.vlgmr.msrb.gmra.mxu2 %vm286_vm0, %v493_v14 }
 0x3aa   : > { %v399_v15 = vpop.f32.mrf.mxu3 }
 0x3ab   : > { %516 = vrot.lane.b32.xlu2 %v399_v15, %s747_s29 }
 0x3b2   : > { %v401_v16 = vpop.f32.mrf.mxu3 }
 0x3ba   : > { %v455_v17 = vpop.f32.mrf.mxu3 }
 0x3bb   : > { %520 = vrot.lane.b32.xlu2 %v455_v17, %s748_s30 }
 0x3be   : > { %v511_v18 = vpop.f32.mrf.mxu2 }
 0x3bf   : > { %524 = vrot.lane.b32.xlu0 %v511_v18, %s749_s4 }
 0x3c2   : > { %v457_v19 = vpop.f32.mrf.mxu3 }
 0x3c6   : > { %v513_v20 = vpop.f32.mrf.mxu2 }
 0x405   : > { %v517_v21 = vpop.permute.xlu2 %516 }
 0x406   : > { %v527_v23 = vsel %vm286_vm0, %v821_v36, %v517_v21 }
 0x415   : > { %v521_v22 = vpop.permute.xlu2 %520 }
 0x416   : > { %v529_v24 = vsel %vm528_vm2, %v527_v23, %v521_v22 }
 0x431   : > { %v525_v25 = vpop.permute.xlu0 %524 }
 0x432   : > { %v531_v26 = vsel %vm530_vm3, %v529_v24, %v525_v25 }
 0x433   : > { %v532_v27 = vpack.c.bf16 %v531_v26, %v531_v26 }
 0x435   : > { %534 = vst.msk [vmem:[%s278_s7] sm:$0xf] %vm533_vm4, %v532_v27 }
 0x436 PF: > { %s13_s14 = sadd.s32 1, %s742_s14   ;;  %s856_s12 = smov %s738_s13 }
 0x437   : > { %p10_p5 = scmp.ge.s32.totalorder %s13_s14, 4   ;;  %s857_s13 = smov %s859_s15 }
 0x439   :  { %12 = sbr.rel (!%p10_p5) target bundleno = 2 (0x2), region = 68 }

// kernel: seq2seq_forward.15
= control target key start
LH: loop header
LB: loop body
LE: loop exit
PB: predicated region body
PF: predicated region fallthrough
CT: control target
= control target key end

     0   :  { %vm19_vm0 = vcmask 523264   ;;  %v202_v1 = vmov 0.0   ;;  %vm47_vm1 = vcmask 261120   ;;  %vm171_vm9 = vcmask 519168   ;;  %s258_s1 = inlined_call_operand.vmem [shape: bf16[32,64], index: 1, kind: input, shape index: {}]   ;;  %s259_s2 = inlined_call_operand.vmem [shape: f32[1,64], index: 2, kind: input, shape index: {}]   ;;  %s260_s0 = inlined_call_operand.vmem [shape: bf16[16,32], index: 0, kind: input, shape index: {}]   ;;  %s261_s3 = inlined_call_operand.vmem [shape: bf16[16,64], index: 3, kind: output, shape index: {}]  }
   0x1   :  { %v195_v0 = vld [vmem:[%s258_s1 + $0x8] sm:$0xff]  ;;  %20 = vst.msk [vmem:[#allocation2] sm:$0xff] %vm19_vm0, %v202_v1  ;;  %v194_v2 = vld [vmem:[%s258_s1] sm:$0xff] }
   0x2   :  { %21 = vst.msk [vmem:[#allocation2 + $0x8] sm:$0xff] %vm19_vm0, %v202_v1  ;;  %57 = vmatpush.bf16.msra.mxu0 %v195_v0  ;;  %v193_v3 = vld [vmem:[%s260_s0] sm:$0xff] }
   0x3   :  { %v197_v8 = vld [vmem:[%s259_s2] ss:$0 sm:$0xff] }
   0x6   :  { %58 = vmatpush.bf16.msra.mxu0 %v194_v2 }
   0x8   :  { %v22_v4 = vld [vmem:[#allocation2] sm:$0xff] }
   0x9   :  { %190 = vmatmul.msk.bf16.vlgmr.msra.gmra.mxu0 %vm47_vm1, %v193_v3  ;;  %v23_v7 = vld [vmem:[#allocation2 + $0x8] sm:$0xff] }
  0x86   :  { %v60_v5 = vpop.f32.mrf.mxu0 }
  0x87   :  { %v65_v6 = vadd.f32 %v60_v5, %v22_v4 }
  0x89   :  { %68 = vst.msk [vmem:[#allocation2] sm:$0xff] %vm19_vm0, %v65_v6 }
  0x8e   :  { %v62_v9 = vpop.f32.mrf.mxu0 }
  0x8f   :  { %v66_v10 = vadd.f32 %v62_v9, %v23_v7 }
  0x90   :  { %v73_v11 = vld [vmem:[#allocation2] sm:$0xff] }
  0x91   :  { %v238_v12 = vadd.f32 %v197_v8, %v73_v11  ;;  %69 = vst.msk [vmem:[#allocation2 + $0x8] sm:$0xff] %vm19_vm0, %v66_v10 }
  0x93   :  { %v83_v13 = vmul.f32 0.70710677, %v238_v12 }
  0x95   :  { %v85_v14 = vmul.f32 %v83_v13, %v83_v13 }
  0x97   :  { %v86_v15 = vmin.f32 %v85_v14, 16.0 }
  0x98   :  { %v74_v16 = vld [vmem:[#allocation2 + $0x8] sm:$0xff] }
  0x99   :  { %v87_v17 = vmul.f32 2.1237322e-06, %v86_v15  ;;  %v98_v18 = vmul.f32 3.8918573e-05, %v86_v15  ;;  %v242_v19 = vadd.f32 %v197_v8, %v74_v16 }
  0x9b   :  { %v88_v20 = vadd.f32 0.00028619796, %v87_v17  ;;  %v99_v21 = vadd.f32 0.001143296, %v98_v18  ;;  %v245_v22 = vmul.f32 0.70710677, %v242_v19 }
  0x9c   :  { %v81_v18 = vmul.f32 0.5, %v238_v12  ;;  %v82_v12 = vmul.f32 0.5, %v242_v19 }
  0x9d   :  { %v89_v23 = vmul.f32 %v88_v20, %v86_v15  ;;  %v100_v24 = vmul.f32 %v99_v21, %v86_v15  ;;  %v125_v25 = vmul.f32 %v245_v22, %v245_v22 }
  0x9f   :  { %v101_v26 = vadd.f32 0.014752088, %v100_v24  ;;  %v90_v27 = vadd.f32 0.0036580483, %v89_v23  ;;  %v126_v28 = vmin.f32 %v125_v25, 16.0 }
  0xa1   :  { %v102_v29 = vmul.f32 %v101_v26, %v86_v15  ;;  %v127_v30 = vmul.f32 2.1237322e-06, %v126_v28  ;;  %v138_v31 = vmul.f32 3.8918573e-05, %v126_v28  ;;  %v91_v33 = vmul.f32 %v90_v27, %v86_v15 }
  0xa3   :  { %v103_v32 = vadd.f32 0.112945676, %v102_v29  ;;  %v128_v34 = vadd.f32 0.00028619796, %v127_v30  ;;  %v139_v35 = vadd.f32 0.001143296, %v138_v31 }
  0xa4   :  { %v92_v40 = vadd.f32 0.05243302, %v91_v33 }
  0xa5   :  { %v104_v36 = vmul.f32 %v103_v32, %v86_v15  ;;  %v129_v37 = vmul.f32 %v128_v34, %v126_v28  ;;  %v140_v38 = vmul.f32 %v139_v35, %v126_v28 }
  0xa6   :  { %v93_v46 = vmul.f32 %v92_v40, %v86_v15 }
  0xa7   :  { %v105_v39 = vadd.f32 0.4994258, %v104_v36  ;;  %v141_v41 = vadd.f32 0.014752088, %v140_v38  ;;  %v130_v43 = vadd.f32 0.0036580483, %v129_v37 }
  0xa8   :  { %v94_v50 = vadd.f32 0.18741608, %v93_v46 }
  0xa9   :  { %v106_v42 = vmul.f32 %v105_v39, %v86_v15  ;;  %v142_v44 = vmul.f32 %v141_v41, %v126_v28  ;;  %v131_v48 = vmul.f32 %v130_v43, %v126_v28 }
  0xaa   :  { %v95_v55 = vmul.f32 %v94_v50, %v86_v15 }
  0xab   :  { %v107_v45 = vadd.f32 1.0, %v106_v42  ;;  %v143_v47 = vadd.f32 0.112945676, %v142_v44  ;;  %v132_v52 = vadd.f32 0.05243302, %v131_v48 }
  0xac   :  { %v96_v61 = vadd.f32 1.1283791, %v95_v55 }
  0xad   :  { %198 = vrcp.f32 %v107_v45  ;;  %v144_v49 = vmul.f32 %v143_v47, %v126_v28  ;;  %v133_v58 = vmul.f32 %v132_v52, %v126_v28  ;;  %v119_v60 = vand.u32 2147483648, %v107_v45 }
  0xae   :  { %v117_v63 = vand.u32 2147483647, %v107_v45  ;;  %vm113_vm3 = vweird.f32 %v107_v45  ;;  %v97_v4 = vmul.f32 %v96_v61, %v83_v13 }
  0xaf   :  { %v145_v51 = vadd.f32 0.4994258, %v144_v49  ;;  %v134_v0 = vadd.f32 0.18741608, %v133_v58  ;;  %v120_v2 = vor.u32 1.1754944e-38, %v119_v60 }
  0xb0   :  { %vm118_vm5 = vcmp.eq.f32.partialorder %v117_v63, 8.507059e+37 }
  0xb1   :  { %v146_v53 = vmul.f32 %v145_v51, %v126_v28  ;;  %v135_v7 = vmul.f32 %v134_v0, %v126_v28 }
  0xb3   :  { %v199_v54 = vpop.eup %198  ;;  %v147_v57 = vadd.f32 1.0, %v146_v53  ;;  %v136_v15 = vadd.f32 1.1283791, %v135_v7 }
  0xb4   :  { %v109_v56 = vmul.f32 %v199_v54, %v107_v45  ;;  %vm114_vm2 = vweird.f32 %v199_v54 }
  0xb5   :  { %200 = vrcp.f32 %v147_v57  ;;  %vm115_vm4 = vmor %vm113_vm3, %vm114_vm2  ;;  %v159_v14 = vand.u32 2147483648, %v147_v57  ;;  %v157_v17 = vand.u32 2147483647, %v147_v57  ;;  %vm153_vm7 = vweird.f32 %v147_v57 }
  0xb6   :  { %v110_v59 = vsub.f32 1.0, %v109_v56  ;;  %v137_v24 = vmul.f32 %v136_v15, %v245_v22 }
  0xb7   :  { %v160_v13 = vor.u32 1.1754944e-38, %v159_v14  ;;  %vm158_vm10 = vcmp.eq.f32.partialorder %v157_v17, 8.507059e+37 }
  0xb8   :  { %v111_v62 = vmul.f32 %v199_v54, %v110_v59 }
  0xba   :  { %v112_v1 = vadd.f32 %v199_v54, %v111_v62 }
  0xbb   :  { %v201_v3 = vpop.eup %200 }
  0xbc   :  { %v116_v5 = vsel %vm115_vm4, %v199_v54, %v112_v1  ;;  %v149_v8 = vmul.f32 %v201_v3, %v147_v57  ;;  %vm154_vm6 = vweird.f32 %v201_v3 }
  0xbd   :  { %v121_v6 = vsel %vm118_vm5, %v120_v2, %v116_v5  ;;  %vm155_vm8 = vmor %vm153_vm7, %vm154_vm6 }
  0xbe   :  { %v122_v9 = vmul.f32 %v121_v6, %v97_v4  ;;  %v150_v10 = vsub.f32 1.0, %v149_v8 }
  0xc0   :  { %v191_v11 = vclamps-f32 %v122_v9, 1.0  ;;  %v151_v16 = vmul.f32 %v201_v3, %v150_v10 }
  0xc2   :  { %v165_v20 = vadd.f32 1.0, %v191_v11  ;;  %v152_v21 = vadd.f32 %v201_v3, %v151_v16 }
  0xc4   :  { %v167_v23 = vmul.f32 %v165_v20, %v81_v18  ;;  %v156_v25 = vsel %vm155_vm8, %v201_v3, %v152_v21 }
  0xc5   :  { %v161_v27 = vsel %vm158_vm10, %v160_v13, %v156_v25 }
  0xc6   :  { %v169_v26 = vpack.c.bf16 %v167_v23, %v167_v23  ;;  %v162_v28 = vmul.f32 %v161_v27, %v137_v24 }
  0xc8   :  { %172 = vst.msk [vmem:[%s261_s3] sm:$0xf] %vm171_vm9, %v169_v26  ;;  %v192_v29 = vclamps-f32 %v162_v28, 1.0 }
  0xca   :  { %v166_v30 = vadd.f32 1.0, %v192_v29 }
  0xcc   :  { %v168_v31 = vmul.f32 %v166_v30, %v82_v12 }
  0xce   :  { %v170_v32 = vpack.c.bf16 %v168_v31, %v168_v31 }
  0xd0   :  { %173 = vst.msk [vmem:[%s261_s3 + $0x4] sm:$0xf] %vm171_vm9, %v170_v32 }

// kernel: seq2seq_forward.16
= control target key start
LH: loop header
LB: loop body
LE: loop exit
PB: predicated region body
PF: predicated region fallthrough
CT: control target
= control target key end

     0   :  { %vm28_vm0 = vcmask 261120   ;;  %v225_v1 = vmov 0.0   ;;  %vm72_vm1 = vcmask 523264   ;;  %v226_v24 = vmov 32.0   ;;  %s303_s1 = inlined_call_operand.vmem [shape: bf16[64,32], index: 1, kind: input, shape index: {}]   ;;  %s304_s0 = inlined_call_operand.vmem [shape: bf16[16,64], index: 0, kind: input, shape index: {}]   ;;  %s305_s2 = inlined_call_operand.vmem [shape: f32[1,32], index: 2, kind: input, shape index: {}]   ;;  %s306_s3 = inlined_call_operand.vmem [shape: bf16[16,32], index: 3, kind: input, shape index: {}]   ;;  %s307_s4 = inlined_call_operand.vmem [shape: f32[1,32], index: 4, kind: input, shape index: {}]   ;;  %s308_s5 = inlined_call_operand.vmem [shape: f32[1,32], index: 5, kind: input, shape index: {}]   ;;  %s309_s6 = inlined_call_operand.vmem [shape: bf16[16,32], index: 6, kind: output, shape index: {}]  }
   0x1   :  { %v209_v0 = vld [vmem:[%s303_s1 + $0x18] sm:$0xff]  ;;  %29 = vst.msk [vmem:[#allocation2] sm:$0xff] %vm28_vm0, %v225_v1  ;;  %v208_v2 = vld [vmem:[%s303_s1 + $0x10] sm:$0xff]  ;;  %v207_v3 = vld [vmem:[%s303_s1 + $0x8] sm:$0xff]  ;;  %219 = vrcp.f32 %v226_v24  ;;  %vm177_vm7 = vcmask 257024  }
   0x2   :  { %30 = vst.msk [vmem:[#allocation2 + $0x8] sm:$0xff] %vm28_vm0, %v225_v1  ;;  %80 = vmatpush.bf16.msra.mxu0 %v209_v0  ;;  %v206_v4 = vld [vmem:[%s303_s1] sm:$0xff] }
   0x3   :  { %v205_v5 = vld [vmem:[%s304_s0] sm:$0xff] }
   0x4   :  { %v211_v10 = vld [vmem:[%s306_s3] sm:$0xff]  }
   0x5   :  { %v216_v11 = vld [vmem:[%s305_s2] ss:$0 sm:$0xff]  ;;  %v212_v14 = vunpack.c.l.bf16 %v211_v10  ;;  %v213_v19 = vunpack.c.h.bf16 %v211_v10 }
   0x6   :  { %81 = vmatpush.bf16.msra.mxu0 %v208_v2  ;;  %v217_v55 = vld [vmem:[%s307_s4] ss:$0 sm:$0xff] }
   0x7   :  { %v220_v25 = vpop.eup %219  ;;  %v218_v58 = vld [vmem:[%s308_s5] ss:$0 sm:$0xff] }
   0x8   :  { %v31_v6 = vld [vmem:[#allocation2] sm:$0xff]  ;;  %v119_v26 = vmul.f32 32.0, %v220_v25  ;;  %vm123_vm2 = vweird.f32 %v220_v25 }
   0x9   :  { %v32_v9 = vld [vmem:[#allocation2 + $0x8] sm:$0xff] }
   0xa   :  { %82 = vmatpush.bf16.msra.mxu0 %v207_v3  ;;  %v120_v27 = vsub.f32 1.0, %v119_v26 }
   0xc   :  { %v121_v28 = vmul.f32 %v220_v25, %v120_v27 }
   0xe   :  { %83 = vmatpush.bf16.msra.mxu0 %v206_v4  ;;  %v122_v29 = vadd.f32 %v220_v25, %v121_v28 }
  0x10   :  { %v124_v30 = vsel %vm123_vm2, %v220_v25, %v122_v29 }
  0x11   :  { %204 = vmatmul.msk.bf16.vlgmr.msra.gmra.mxu0 %vm72_vm1, %v205_v5 }
  0x8e   :  { %v85_v7 = vpop.f32.mrf.mxu0 }
  0x8f   :  { %v90_v8 = vadd.f32 %v85_v7, %v31_v6 }
  0x91   :  { %93 = vst.msk [vmem:[#allocation2] sm:$0xff] %vm28_vm0, %v90_v8 }
  0x96   :  { %v87_v12 = vpop.f32.mrf.mxu0 }
  0x97   :  { %v91_v13 = vadd.f32 %v87_v12, %v32_v9 }
  0x98   :  { %v98_v15 = vld [vmem:[#allocation2] sm:$0xff] }
  0x99   :  { %94 = vst.msk [vmem:[#allocation2 + $0x8] sm:$0xff] %vm28_vm0, %v91_v13  ;;  %v104_v16 = vadd.f32 %v216_v11, %v98_v15 }
  0x9b   :  { %v110_v17 = vadd.f32 %v212_v14, %v104_v16 }
  0x9d   :  { %v112_v18 = vsel %vm28_vm0, %v110_v17, 0.0 }
  0x9e   :  { %113 = vadd.xlane.f32.xlu0 %v112_v18 }
  0xa0   :  { %v99_v20 = vld [vmem:[#allocation2 + $0x8] sm:$0xff] }
  0xa1   :  { %v105_v21 = vadd.f32 %v216_v11, %v99_v20 }
  0xa3   :  { %v111_v22 = vadd.f32 %v213_v19, %v105_v21 }
  0xa5   :  { %v115_v23 = vsel %vm28_vm0, %v111_v22, 0.0 }
  0xa6   :  { %116 = vadd.xlane.f32.xlu0 %v115_v23 }
 0x111   :  { %v114_v31 = vpop.xlane.xlu0 %113 }
 0x112   :  { %v125_v32 = vmul.f32 %v124_v30, %v114_v31 }
 0x114   :  { %v127_v33 = vsub.f32 %v110_v17, %v125_v32 }
 0x116   :  { %v129_v34 = vmul.f32 %v127_v33, %v127_v33 }
 0x118   :  { %v131_v35 = vsel %vm28_vm0, %v129_v34, 0.0 }
 0x119   :  { %132 = vadd.xlane.f32.xlu1 %v131_v35  ;;  %v117_v36 = vpop.xlane.xlu0 %116 }
 0x11a   :  { %v126_v37 = vmul.f32 %v124_v30, %v117_v36 }
 0x11c   :  { %v128_v38 = vsub.f32 %v111_v22, %v126_v37 }
 0x11e   :  { %v130_v39 = vmul.f32 %v128_v38, %v128_v38 }
 0x120   :  { %v134_v40 = vsel %vm28_vm0, %v130_v39, 0.0 }
 0x121   :  { %135 = vadd.xlane.f32.xlu1 %v134_v40 }
 0x18c   :  { %v133_v41 = vpop.xlane.xlu1 %132 }
 0x18d   :  { %v137_v42 = vmul.f32 %v133_v41, %v124_v30 }
 0x18f   :  { %v139_v43 = vadd.f32 1e-05, %v137_v42 }
 0x191   :  { %221 = vrsqrt.f32 %v139_v43  ;;  %vm147_vm4 = vweird.f32 %v139_v43 }
 0x194   :  { %v136_v44 = vpop.xlane.xlu1 %135 }
 0x195   :  { %v138_v45 = vmul.f32 %v136_v44, %v124_v30 }
 0x197   :  { %v222_v46 = vpop.eup %221  ;;  %v140_v47 = vadd.f32 1e-05, %v138_v45 }
 0x198   :  { %v142_v48 = vmul.f32 %v222_v46, %v139_v43  ;;  %vm148_vm3 = vweird.f32 %v222_v46 }
 0x199   :  { %223 = vrsqrt.f32 %v140_v47  ;;  %vm149_vm5 = vmor %vm147_vm4, %vm148_vm3  ;;  %vm157_vm8 = vweird.f32 %v140_v47 }
 0x19a   :  { %v143_v49 = vmul.f32 %v222_v46, %v142_v48 }
 0x19c   :  { %v144_v50 = vmul.f32 0.5, %v143_v49 }
 0x19e   :  { %v145_v51 = vsub.f32 1.5, %v144_v50 }
 0x19f   :  { %v224_v52 = vpop.eup %223 }
 0x1a0   :  { %v146_v53 = vmul.f32 %v222_v46, %v145_v51  ;;  %v152_v54 = vmul.f32 %v224_v52, %v140_v47  ;;  %vm158_vm6 = vweird.f32 %v224_v52 }
 0x1a1   :  { %vm159_vm9 = vmor %vm157_vm8, %vm158_vm6 }
 0x1a2   :  { %v150_v56 = vsel %vm149_vm5, %v222_v46, %v146_v53  ;;  %v153_v57 = vmul.f32 %v224_v52, %v152_v54 }
 0x1a3   :  { %v161_v59 = vmul.f32 %v150_v56, %v127_v33 }
 0x1a4   :  { %v154_v60 = vmul.f32 0.5, %v153_v57 }
 0x1a5   :  { %v167_v61 = vmul.f32 %v217_v55, %v161_v59 }
 0x1a6   :  { %v155_v62 = vsub.f32 1.5, %v154_v60 }
 0x1a7   :  { %v173_v63 = vadd.f32 %v218_v58, %v167_v61 }
 0x1a8   :  { %v156_v0 = vmul.f32 %v224_v52, %v155_v62 }
 0x1a9   :  { %v175_v1 = vpack.c.bf16 %v173_v63, %v173_v63 }
 0x1aa   :  { %v160_v2 = vsel %vm159_vm9, %v224_v52, %v156_v0 }
 0x1ab   :  { %178 = vst.msk [vmem:[%s309_s6] sm:$0xf] %vm177_vm7, %v175_v1  ;;  %v162_v3 = vmul.f32 %v160_v2, %v128_v38 }
 0x1ad   :  { %v168_v4 = vmul.f32 %v217_v55, %v162_v3 }
 0x1af   :  { %v174_v5 = vadd.f32 %v218_v58, %v168_v4 }
 0x1b1   :  { %v176_v6 = vpack.c.bf16 %v174_v5, %v174_v5 }
 0x1b3   :  { %179 = vst.msk [vmem:[%s309_s6 + $0x4] sm:$0xf] %vm177_vm7, %v176_v6 }

</bundles_post_ra>
